<compile_context>
chip_gen: v7x
topology: tpu7x:2x2x1
jax: 0.10.0
libtpu: 0.0.40
codegen_flags: <defaults>
</compile_context>

<pallas_src>
import jax
import jax.numpy as jnp
import numpy as np
from jax import lax
from jax.experimental import pallas as pl
from jax.experimental.pallas import tpu as pltpu

LN_EPS = 1e-5


# ------------------------------ Pallas kernel --------------------------------
def _make_bandsplit_kernel(band_specs, c2, tt, e_pad, eps):
    """Build a kernel closed over the static band layout."""
    band_specs = tuple((int(fs), int(fe)) for fs, fe in band_specs)

    def kernel(x_ref, gamma_ref, beta_ref, w_ref, bias_ref, o_ref):
        # x_ref:     (1, C2, TT, F)          f32   one (batch, time-tile) slab
        # gamma_ref: (n_bands, C2, 1, BWmax) f32   LayerNorm weight (freq zero-padded)
        # beta_ref:  (n_bands, C2, 1, BWmax) f32   LayerNorm bias
        # w_ref:     (n_bands, C2, BWmax, E_pad)   Linear weight (MXU dtype, zero-padded)
        # bias_ref:  (n_bands, 1, E_pad)     f32   Linear bias (zero-padded)
        # o_ref:     (1, n_bands, TT, E_pad) f32
        for i, (fs, fe) in enumerate(band_specs):          # static unroll over bands
            bw = fe - fs
            inv_cnt = 1.0 / float(c2 * bw)                 # compile-time 1/feat_count

            xb = x_ref[0, :, :, fs:fe]                     # (C2, TT, bw) f32, static slice

            # LayerNorm over the (C2, bw) feature set of every time row (f32 math,
            # biased variance, multiplies by the precomputed inverse count).
            s = jnp.sum(xb, axis=2, keepdims=True)                     # (C2, TT, 1)
            mean = jnp.sum(s, axis=0, keepdims=True) * inv_cnt         # (1,  TT, 1)
            diff = xb - mean
            s2 = jnp.sum(diff * diff, axis=2, keepdims=True)
            var = jnp.sum(s2, axis=0, keepdims=True) * inv_cnt
            inv = lax.rsqrt(var + eps)
            xn = diff * inv * gamma_ref[i, :, :, :bw] + beta_ref[i, :, :, :bw]

            # Linear: bf16 (or f32) MXU operands, f32 accumulation.  Contraction over
            # the (channel*reim, freq) features is done as C2 small K=bw matmuls.
            xn = xn.astype(w_ref.dtype)
            zb = jnp.zeros((tt, e_pad), jnp.float32)
            for c in range(c2):                            # static unroll over (chan, re/im)
                zb = zb + jnp.dot(xn[c], w_ref[i, c, :bw, :],
                                  preferred_element_type=jnp.float32)

            o_ref[0, i] = zb + bias_ref[i]                 # lane-dense (TT, E_pad) store
    return kernel


def _pick_time_tile(n_time, max_tile=256):
    for tile in (max_tile, 256, 128, 64, 32, 16, 8):
        if tile <= max_tile and n_time % tile == 0:
            return tile
    return n_time                                          # fall back to full time axis


def bandsplit_pallas(xr, gamma, beta, w, bias, band_specs, *, emb_dim, time_tile=256):
    """xr: (B, C2, T, F) float32.  Returns (B, n_bands, T, emb_dim) float32."""
    B, c2, T, F = xr.shape
    n_bands = len(band_specs)
    e_pad = bias.shape[-1]
    bw_max = w.shape[2]
    tt = _pick_time_tile(T, time_tile)

    # VMEM budget: double-buffered x/out blocks + resident (constant-index) weights.
    w_itemsize = jnp.dtype(w.dtype).itemsize
    x_blk = c2 * tt * F * 4
    o_blk = n_bands * tt * e_pad * 4
    wts = (gamma.size + beta.size + bias.size) * 4 + w.size * w_itemsize
    need = 2 * (x_blk + o_blk) + 2 * wts + (2 << 20)
    cp_kwargs = dict(dimension_semantics=("parallel", "parallel"))
    if need > 32 * 1024 * 1024:                            # above scoped-VMEM default
        cp_kwargs["vmem_limit_bytes"] = int(min(need, 96 * 1024 * 1024))

    kernel = _make_bandsplit_kernel(band_specs, c2, tt, e_pad, LN_EPS)
    out = pl.pallas_call(
        kernel,
        out_shape=jax.ShapeDtypeStruct((B, n_bands, T, e_pad), jnp.float32),
        grid=(B, T // tt),
        in_specs=[
            pl.BlockSpec((1, c2, tt, F), lambda b, t: (b, 0, t, 0)),           # x slab
            pl.BlockSpec((n_bands, c2, 1, bw_max), lambda b, t: (0, 0, 0, 0)),  # LN gamma
            pl.BlockSpec((n_bands, c2, 1, bw_max), lambda b, t: (0, 0, 0, 0)),  # LN beta
            pl.BlockSpec((n_bands, c2, bw_max, e_pad), lambda b, t: (0, 0, 0, 0)),  # W
            pl.BlockSpec((n_bands, 1, e_pad), lambda b, t: (0, 0, 0)),          # bias
        ],
        out_specs=pl.BlockSpec((1, n_bands, tt, e_pad), lambda b, t: (b, 0, t, 0)),
        compiler_params=pltpu.CompilerParams(**cp_kwargs),
    )(xr, gamma, beta, w, bias)
    return out[..., :emb_dim]                              # drop the lane padding


# -------------------------------- JAX glue ------------------------------------
def band_widths_from_specs(band_specs):
    return [fe - fs for fs, fe in band_specs]


def init_params(key, band_specs, in_channel, emb_dim):
    """Deterministic synthetic per-band LayerNorm + Linear params, packed for the kernel."""
    reim = 2
    c2 = in_channel * reim
    widths = band_widths_from_specs(band_specs)
    n_bands = len(widths)
    bw_max = max(widths)
    e_pad = ((emb_dim + 127) // 128) * 128                 # lane-dense output width

    gamma = np.zeros((n_bands, c2, 1, bw_max), np.float32)
    beta = np.zeros((n_bands, c2, 1, bw_max), np.float32)
    w = np.zeros((n_bands, c2, bw_max, e_pad), np.float32)
    bias = np.zeros((n_bands, 1, e_pad), np.float32)
    per_band = []
    for i, bw in enumerate(widths):
        feat = c2 * bw
        k = jax.random.fold_in(key, i)
        kg, kb, kw, kbi = jax.random.split(k, 4)
        g_i = 1.0 + 0.05 * jax.random.normal(kg, (feat,), jnp.float32)
        b_i = 0.05 * jax.random.normal(kb, (feat,), jnp.float32)
        w_i = jax.random.normal(kw, (feat, emb_dim), jnp.float32) / np.sqrt(feat)
        bi_i = 0.05 * jax.random.normal(kbi, (emb_dim,), jnp.float32)
        per_band.append((g_i, b_i, w_i, bi_i))
        # feature ordering is (channel, re/im, freq) == flat index c2*bw + f
        gamma[i, :, 0, :bw] = np.asarray(g_i).reshape(c2, bw)
        beta[i, :, 0, :bw] = np.asarray(b_i).reshape(c2, bw)
        w[i, :, :bw, :emb_dim] = np.asarray(w_i).reshape(c2, bw, emb_dim)
        bias[i, 0, :emb_dim] = np.asarray(bi_i)

    packed = dict(gamma=jnp.asarray(gamma), beta=jnp.asarray(beta),
                  w=jnp.asarray(w), bias=jnp.asarray(bias),
                  c2=c2, bw_max=bw_max, e_pad=e_pad, emb_dim=emb_dim)
    return packed, per_band


def bandsplit_forward(x_complex, band_specs, packed, *, mxu_dtype=jnp.bfloat16,
                      time_tile=256):
    """Full BandSplitModule.forward with the hot path in Pallas."""
    B, C, F, T = x_complex.shape
    c2 = packed["c2"]
    # view_as_real + permute, laid out as (B, C*2, T, F); feature order (c, re/im, f).
    xr = jnp.stack([jnp.real(x_complex), jnp.imag(x_complex)], axis=2)   # (B, C, 2, F, T)
    xr = xr.reshape(B, c2, F, T)
    xr = jnp.swapaxes(xr, 2, 3).astype(jnp.float32)                      # (B, C2, T, F)
    # TODO(synk): treat_channel_as_feature=False / normalize_channel_independently=True
    #             configuration branches are not implemented (module defaults only).
    return bandsplit_pallas(
        xr, packed["gamma"], packed["beta"], packed["w"].astype(mxu_dtype),
        packed["bias"], band_specs, emb_dim=packed["emb_dim"], time_tile=time_tile)


# ----------------------------- pure-JAX reference ------------------------------
def bandsplit_reference(x_complex, band_specs, per_band, mxu_dtype=None):
    """Mirrors the torch module; optionally casts matmul operands like the kernel."""
    B, C, F, T = x_complex.shape
    xr = jnp.stack([jnp.real(x_complex), jnp.imag(x_complex)], axis=-1)  # (B,C,F,T,2)
    xr = jnp.transpose(xr, (0, 3, 1, 4, 2)).astype(jnp.float32)          # (B,T,C,2,F)
    outs = []
    for i, (fs, fe) in enumerate(band_specs):
        g, be, w, bi = per_band[i]
        xb = xr[..., fs:fe].reshape(B, T, -1)                            # (B,T,feat)
        inv_cnt = 1.0 / xb.shape[-1]
        mean = jnp.sum(xb, axis=-1, keepdims=True) * inv_cnt
        diff = xb - mean
        var = jnp.sum(diff * diff, axis=-1, keepdims=True) * inv_cnt
        xn = diff * lax.rsqrt(var + LN_EPS) * g + be
        if mxu_dtype is not None:
            z = jnp.dot(xn.astype(mxu_dtype), w.astype(mxu_dtype),
                        preferred_element_type=jnp.float32) + bi
        else:
            z = xn @ w + bi
        outs.append(z)
    return jnp.stack(outs, axis=1)                                       # (B,nb,T,E)


# ------------------------------------ main -------------------------------------
if __name__ == "__main__":
    key = jax.random.PRNGKey(0)

    # Small shapes: batch=2, in_channel=2, n_freq=16, n_time=8, emb_dim=32.
    B, C, Fq, T = 2, 2, 16, 8
    emb_dim = 32
    band_specs = [(0, 3), (3, 8), (8, 16)]          # no gaps, bandwidths 3 / 5 / 8

    kx, kp = jax.random.split(key)
    x_re = jax.random.normal(jax.random.fold_in(kx, 0), (B, C, Fq, T), jnp.float32)
    x_im = jax.random.normal(jax.random.fold_in(kx, 1), (B, C, Fq, T), jnp.float32)
    x = (x_re + 1j * x_im).astype(jnp.complex64)

    packed, per_band = init_params(kp, band_specs, in_channel=C, emb_dim=emb_dim)

    # 1) Semantics check with f32 MXU operands (tolerance covers XLA-vs-Mosaic
    #    f32 matmul pass-count differences; structural bugs are far larger).
    z32 = jax.block_until_ready(
        bandsplit_forward(x, band_specs, packed, mxu_dtype=jnp.float32))
    ref32 = bandsplit_reference(x, band_specs, per_band)
    np.testing.assert_allclose(np.asarray(z32), np.asarray(ref32), rtol=1e-2, atol=1e-2)
    assert z32.shape == (B, len(band_specs), T, emb_dim)

    # 2) Performance configuration: bf16 MXU operands, f32 LayerNorm + f32 accumulation.
    zbf = jax.block_until_ready(
        bandsplit_forward(x, band_specs, packed, mxu_dtype=jnp.bfloat16))
    refbf = bandsplit_reference(x, band_specs, per_band, mxu_dtype=jnp.bfloat16)
    np.testing.assert_allclose(np.asarray(zbf), np.asarray(refbf), rtol=2e-2, atol=2e-2)
    np.testing.assert_allclose(np.asarray(zbf), np.asarray(ref32), rtol=5e-2, atol=5e-2)
    assert zbf.shape == (B, len(band_specs), T, emb_dim)

    print("KERNEL_OK")
</pallas_src>

<mosaic_0001>
module attributes {stable_mosaic.version = 11 : i64} {
  func.func @kernel(%arg0: i32, %arg1: i32, %arg2: memref<1x4x8x16xf32, #tpu.memory_space<vmem>>, %arg3: memref<3x4x1x8xf32, #tpu.memory_space<vmem>>, %arg4: memref<3x4x1x8xf32, #tpu.memory_space<vmem>>, %arg5: memref<3x4x8x128xf32, #tpu.memory_space<vmem>>, %arg6: memref<3x1x128xf32, #tpu.memory_space<vmem>>, %arg7: memref<1x3x8x128xf32, #tpu.memory_space<vmem>>) attributes {dimension_semantics = [#tpu.dimension_semantics<parallel>, #tpu.dimension_semantics<parallel>], iteration_bounds = array<i64: 2, 1>, scalar_prefetch = 0 : i64, scratch_operands = 0 : i64, tpu.core_type = #tpu.core_type<tc>, window_params = [{transform_indices = @transform_0, window_bounds = array<i64: 1, 4, 8, 16>}, {pipeline_mode = #tpu.pipeline_mode<synchronous>, transform_indices = @transform_1, window_bounds = array<i64: 3, 4, 1, 8>}, {pipeline_mode = #tpu.pipeline_mode<synchronous>, transform_indices = @transform_2, window_bounds = array<i64: 3, 4, 1, 8>}, {pipeline_mode = #tpu.pipeline_mode<synchronous>, transform_indices = @transform_3, window_bounds = array<i64: 3, 4, 8, 128>}, {pipeline_mode = #tpu.pipeline_mode<synchronous>, transform_indices = @transform_4, window_bounds = array<i64: 3, 1, 128>}, {transform_indices = @transform_5, window_bounds = array<i64: 1, 3, 8, 128>}]} {
    %c0 = arith.constant 0 : index
    %c0_0 = arith.constant 0 : index
    %c0_1 = arith.constant 0 : index
    %c0_2 = arith.constant 0 : index
    %0 = vector.load %arg2[%c0, %c0_0, %c0_1, %c0_2] : memref<1x4x8x16xf32, #tpu.memory_space<vmem>>, vector<1x4x8x3xf32>
    %1 = vector.shape_cast %0 : vector<1x4x8x3xf32> to vector<4x8x3xf32>
    %cst = arith.constant dense<0.000000e+00> : vector<4x8xf32>
    %2 = vector.multi_reduction <add>, %1, %cst [2] : vector<4x8x3xf32> to vector<4x8xf32>
    %3 = vector.shape_cast %2 : vector<4x8xf32> to vector<4x8x1xf32>
    %cst_3 = arith.constant dense<0.000000e+00> : vector<8x1xf32>
    %4 = vector.multi_reduction <add>, %3, %cst_3 [0] : vector<4x8x1xf32> to vector<8x1xf32>
    %5 = vector.shape_cast %4 : vector<8x1xf32> to vector<1x8x1xf32>
    %cst_4 = arith.constant 0.0833333358 : f32
    %6 = vector.broadcast %cst_4 : f32 to vector<1x8x1xf32>
    %7 = arith.mulf %5, %6 : vector<1x8x1xf32>
    %8 = vector.broadcast %7 : vector<1x8x1xf32> to vector<4x8x3xf32>
    %9 = arith.subf %1, %8 : vector<4x8x3xf32>
    %10 = arith.mulf %9, %9 : vector<4x8x3xf32>
    %cst_5 = arith.constant dense<0.000000e+00> : vector<4x8xf32>
    %11 = vector.multi_reduction <add>, %10, %cst_5 [2] : vector<4x8x3xf32> to vector<4x8xf32>
    %12 = vector.shape_cast %11 : vector<4x8xf32> to vector<4x8x1xf32>
    %cst_6 = arith.constant dense<0.000000e+00> : vector<8x1xf32>
    %13 = vector.multi_reduction <add>, %12, %cst_6 [0] : vector<4x8x1xf32> to vector<8x1xf32>
    %14 = vector.shape_cast %13 : vector<8x1xf32> to vector<1x8x1xf32>
    %cst_7 = arith.constant 0.0833333358 : f32
    %15 = vector.broadcast %cst_7 : f32 to vector<1x8x1xf32>
    %16 = arith.mulf %14, %15 : vector<1x8x1xf32>
    %cst_8 = arith.constant 9.99999974E-6 : f32
    %17 = vector.broadcast %cst_8 : f32 to vector<1x8x1xf32>
    %18 = arith.addf %16, %17 : vector<1x8x1xf32>
    %19 = math.rsqrt %18 : vector<1x8x1xf32>
    %20 = vector.broadcast %19 : vector<1x8x1xf32> to vector<4x8x3xf32>
    %21 = arith.mulf %9, %20 : vector<4x8x3xf32>
    %c0_9 = arith.constant 0 : index
    %c0_10 = arith.constant 0 : index
    %c0_11 = arith.constant 0 : index
    %c0_12 = arith.constant 0 : index
    %22 = vector.load %arg3[%c0_9, %c0_10, %c0_11, %c0_12] : memref<3x4x1x8xf32, #tpu.memory_space<vmem>>, vector<1x4x1x3xf32>
    %23 = vector.shape_cast %22 : vector<1x4x1x3xf32> to vector<4x1x3xf32>
    %24 = vector.broadcast %23 : vector<4x1x3xf32> to vector<4x8x3xf32>
    %25 = arith.mulf %21, %24 : vector<4x8x3xf32>
    %c0_13 = arith.constant 0 : index
    %c0_14 = arith.constant 0 : index
    %c0_15 = arith.constant 0 : index
    %c0_16 = arith.constant 0 : index
    %26 = vector.load %arg4[%c0_13, %c0_14, %c0_15, %c0_16] : memref<3x4x1x8xf32, #tpu.memory_space<vmem>>, vector<1x4x1x3xf32>
    %27 = vector.shape_cast %26 : vector<1x4x1x3xf32> to vector<4x1x3xf32>
    %28 = vector.broadcast %27 : vector<4x1x3xf32> to vector<4x8x3xf32>
    %29 = arith.addf %25, %28 : vector<4x8x3xf32>
    %cst_17 = arith.constant 0.000000e+00 : f32
    %30 = vector.broadcast %cst_17 : f32 to vector<8x128xf32>
    %31 = vector.extract_strided_slice %29 {offsets = [0, 0, 0], sizes = [1, 8, 3], strides = [1, 1, 1]} : vector<4x8x3xf32> to vector<1x8x3xf32>
    %32 = vector.shape_cast %31 : vector<1x8x3xf32> to vector<8x3xf32>
    %c0_18 = arith.constant 0 : index
    %c0_19 = arith.constant 0 : index
    %c0_20 = arith.constant 0 : index
    %c0_21 = arith.constant 0 : index
    %33 = vector.load %arg5[%c0_18, %c0_19, %c0_20, %c0_21] : memref<3x4x8x128xf32, #tpu.memory_space<vmem>>, vector<1x1x3x128xf32>
    %34 = vector.shape_cast %33 : vector<1x1x3x128xf32> to vector<3x128xf32>
    %cst_22 = arith.constant dense<0.000000e+00> : vector<8x128xf32>
    %35 = tpu.matmul %32, %34, %cst_22 {dimension_numbers = #tpu.dot_dimension_numbers<[1], [0], [0], [1], [0, 0, 1, 1], [], []>} : vector<8x3xf32>, vector<3x128xf32>, vector<8x128xf32> -> vector<8x128xf32>
    %36 = arith.addf %30, %35 : vector<8x128xf32>
    %37 = vector.extract_strided_slice %29 {offsets = [1, 0, 0], sizes = [1, 8, 3], strides = [1, 1, 1]} : vector<4x8x3xf32> to vector<1x8x3xf32>
    %38 = vector.shape_cast %37 : vector<1x8x3xf32> to vector<8x3xf32>
    %c0_23 = arith.constant 0 : index
    %c1 = arith.constant 1 : index
    %c0_24 = arith.constant 0 : index
    %c0_25 = arith.constant 0 : index
    %39 = vector.load %arg5[%c0_23, %c1, %c0_24, %c0_25] : memref<3x4x8x128xf32, #tpu.memory_space<vmem>>, vector<1x1x3x128xf32>
    %40 = vector.shape_cast %39 : vector<1x1x3x128xf32> to vector<3x128xf32>
    %cst_26 = arith.constant dense<0.000000e+00> : vector<8x128xf32>
    %41 = tpu.matmul %38, %40, %cst_26 {dimension_numbers = #tpu.dot_dimension_numbers<[1], [0], [0], [1], [0, 0, 1, 1], [], []>} : vector<8x3xf32>, vector<3x128xf32>, vector<8x128xf32> -> vector<8x128xf32>
    %42 = arith.addf %36, %41 : vector<8x128xf32>
    %43 = vector.extract_strided_slice %29 {offsets = [2, 0, 0], sizes = [1, 8, 3], strides = [1, 1, 1]} : vector<4x8x3xf32> to vector<1x8x3xf32>
    %44 = vector.shape_cast %43 : vector<1x8x3xf32> to vector<8x3xf32>
    %c0_27 = arith.constant 0 : index
    %c2 = arith.constant 2 : index
    %c0_28 = arith.constant 0 : index
    %c0_29 = arith.constant 0 : index
    %45 = vector.load %arg5[%c0_27, %c2, %c0_28, %c0_29] : memref<3x4x8x128xf32, #tpu.memory_space<vmem>>, vector<1x1x3x128xf32>
    %46 = vector.shape_cast %45 : vector<1x1x3x128xf32> to vector<3x128xf32>
    %cst_30 = arith.constant dense<0.000000e+00> : vector<8x128xf32>
    %47 = tpu.matmul %44, %46, %cst_30 {dimension_numbers = #tpu.dot_dimension_numbers<[1], [0], [0], [1], [0, 0, 1, 1], [], []>} : vector<8x3xf32>, vector<3x128xf32>, vector<8x128xf32> -> vector<8x128xf32>
    %48 = arith.addf %42, %47 : vector<8x128xf32>
    %49 = vector.extract_strided_slice %29 {offsets = [3, 0, 0], sizes = [1, 8, 3], strides = [1, 1, 1]} : vector<4x8x3xf32> to vector<1x8x3xf32>
    %50 = vector.shape_cast %49 : vector<1x8x3xf32> to vector<8x3xf32>
    %c0_31 = arith.constant 0 : index
    %c3 = arith.constant 3 : index
    %c0_32 = arith.constant 0 : index
    %c0_33 = arith.constant 0 : index
    %51 = vector.load %arg5[%c0_31, %c3, %c0_32, %c0_33] : memref<3x4x8x128xf32, #tpu.memory_space<vmem>>, vector<1x1x3x128xf32>
    %52 = vector.shape_cast %51 : vector<1x1x3x128xf32> to vector<3x128xf32>
    %cst_34 = arith.constant dense<0.000000e+00> : vector<8x128xf32>
    %53 = tpu.matmul %50, %52, %cst_34 {dimension_numbers = #tpu.dot_dimension_numbers<[1], [0], [0], [1], [0, 0, 1, 1], [], []>} : vector<8x3xf32>, vector<3x128xf32>, vector<8x128xf32> -> vector<8x128xf32>
    %54 = arith.addf %48, %53 : vector<8x128xf32>
    %c0_35 = arith.constant 0 : index
    %c0_36 = arith.constant 0 : index
    %c0_37 = arith.constant 0 : index
    %55 = vector.load %arg6[%c0_35, %c0_36, %c0_37] : memref<3x1x128xf32, #tpu.memory_space<vmem>>, vector<1x1x128xf32>
    %56 = vector.shape_cast %55 : vector<1x1x128xf32> to vector<1x128xf32>
    %57 = vector.broadcast %56 : vector<1x128xf32> to vector<8x128xf32>
    %58 = arith.addf %54, %57 : vector<8x128xf32>
    %c0_38 = arith.constant 0 : index
    %c0_39 = arith.constant 0 : index
    %c0_40 = arith.constant 0 : index
    %c0_41 = arith.constant 0 : index
    %59 = vector.load %arg7[%c0_38, %c0_39, %c0_40, %c0_41] : memref<1x3x8x128xf32, #tpu.memory_space<vmem>>, vector<1x1x8x128xf32>
    %60 = vector.shape_cast %59 : vector<1x1x8x128xf32> to vector<8x128xf32>
    %61 = vector.shape_cast %58 : vector<8x128xf32> to vector<1x1x8x128xf32>
    tpu.vector_store %arg7[%c0_38, %c0_39, %c0_40, %c0_41], %61 {strides = array<i32>} : memref<1x3x8x128xf32, #tpu.memory_space<vmem>>, vector<1x1x8x128xf32>,
    %c0_42 = arith.constant 0 : index
    %c0_43 = arith.constant 0 : index
    %c0_44 = arith.constant 0 : index
    %c3_45 = arith.constant 3 : index
    %62 = vector.load %arg2[%c0_42, %c0_43, %c0_44, %c3_45] : memref<1x4x8x16xf32, #tpu.memory_space<vmem>>, vector<1x4x8x5xf32>
    %63 = vector.shape_cast %62 : vector<1x4x8x5xf32> to vector<4x8x5xf32>
    %cst_46 = arith.constant dense<0.000000e+00> : vector<4x8xf32>
    %64 = vector.multi_reduction <add>, %63, %cst_46 [2] : vector<4x8x5xf32> to vector<4x8xf32>
    %65 = vector.shape_cast %64 : vector<4x8xf32> to vector<4x8x1xf32>
    %cst_47 = arith.constant dense<0.000000e+00> : vector<8x1xf32>
    %66 = vector.multi_reduction <add>, %65, %cst_47 [0] : vector<4x8x1xf32> to vector<8x1xf32>
    %67 = vector.shape_cast %66 : vector<8x1xf32> to vector<1x8x1xf32>
    %cst_48 = arith.constant 5.000000e-02 : f32
    %68 = vector.broadcast %cst_48 : f32 to vector<1x8x1xf32>
    %69 = arith.mulf %67, %68 : vector<1x8x1xf32>
    %70 = vector.broadcast %69 : vector<1x8x1xf32> to vector<4x8x5xf32>
    %71 = arith.subf %63, %70 : vector<4x8x5xf32>
    %72 = arith.mulf %71, %71 : vector<4x8x5xf32>
    %cst_49 = arith.constant dense<0.000000e+00> : vector<4x8xf32>
    %73 = vector.multi_reduction <add>, %72, %cst_49 [2] : vector<4x8x5xf32> to vector<4x8xf32>
    %74 = vector.shape_cast %73 : vector<4x8xf32> to vector<4x8x1xf32>
    %cst_50 = arith.constant dense<0.000000e+00> : vector<8x1xf32>
    %75 = vector.multi_reduction <add>, %74, %cst_50 [0] : vector<4x8x1xf32> to vector<8x1xf32>
    %76 = vector.shape_cast %75 : vector<8x1xf32> to vector<1x8x1xf32>
    %cst_51 = arith.constant 5.000000e-02 : f32
    %77 = vector.broadcast %cst_51 : f32 to vector<1x8x1xf32>
    %78 = arith.mulf %76, %77 : vector<1x8x1xf32>
    %cst_52 = arith.constant 9.99999974E-6 : f32
    %79 = vector.broadcast %cst_52 : f32 to vector<1x8x1xf32>
    %80 = arith.addf %78, %79 : vector<1x8x1xf32>
    %81 = math.rsqrt %80 : vector<1x8x1xf32>
    %82 = vector.broadcast %81 : vector<1x8x1xf32> to vector<4x8x5xf32>
    %83 = arith.mulf %71, %82 : vector<4x8x5xf32>
    %c1_53 = arith.constant 1 : index
    %c0_54 = arith.constant 0 : index
    %c0_55 = arith.constant 0 : index
    %c0_56 = arith.constant 0 : index
    %84 = vector.load %arg3[%c1_53, %c0_54, %c0_55, %c0_56] : memref<3x4x1x8xf32, #tpu.memory_space<vmem>>, vector<1x4x1x5xf32>
    %85 = vector.shape_cast %84 : vector<1x4x1x5xf32> to vector<4x1x5xf32>
    %86 = vector.broadcast %85 : vector<4x1x5xf32> to vector<4x8x5xf32>
    %87 = arith.mulf %83, %86 : vector<4x8x5xf32>
    %c1_57 = arith.constant 1 : index
    %c0_58 = arith.constant 0 : index
    %c0_59 = arith.constant 0 : index
    %c0_60 = arith.constant 0 : index
    %88 = vector.load %arg4[%c1_57, %c0_58, %c0_59, %c0_60] : memref<3x4x1x8xf32, #tpu.memory_space<vmem>>, vector<1x4x1x5xf32>
    %89 = vector.shape_cast %88 : vector<1x4x1x5xf32> to vector<4x1x5xf32>
    %90 = vector.broadcast %89 : vector<4x1x5xf32> to vector<4x8x5xf32>
    %91 = arith.addf %87, %90 : vector<4x8x5xf32>
    %cst_61 = arith.constant 0.000000e+00 : f32
    %92 = vector.broadcast %cst_61 : f32 to vector<8x128xf32>
    %93 = vector.extract_strided_slice %91 {offsets = [0, 0, 0], sizes = [1, 8, 5], strides = [1, 1, 1]} : vector<4x8x5xf32> to vector<1x8x5xf32>
    %94 = vector.shape_cast %93 : vector<1x8x5xf32> to vector<8x5xf32>
    %c1_62 = arith.constant 1 : index
    %c0_63 = arith.constant 0 : index
    %c0_64 = arith.constant 0 : index
    %c0_65 = arith.constant 0 : index
    %95 = vector.load %arg5[%c1_62, %c0_63, %c0_64, %c0_65] : memref<3x4x8x128xf32, #tpu.memory_space<vmem>>, vector<1x1x5x128xf32>
    %96 = vector.shape_cast %95 : vector<1x1x5x128xf32> to vector<5x128xf32>
    %cst_66 = arith.constant dense<0.000000e+00> : vector<8x128xf32>
    %97 = tpu.matmul %94, %96, %cst_66 {dimension_numbers = #tpu.dot_dimension_numbers<[1], [0], [0], [1], [0, 0, 1, 1], [], []>} : vector<8x5xf32>, vector<5x128xf32>, vector<8x128xf32> -> vector<8x128xf32>
    %98 = arith.addf %92, %97 : vector<8x128xf32>
    %99 = vector.extract_strided_slice %91 {offsets = [1, 0, 0], sizes = [1, 8, 5], strides = [1, 1, 1]} : vector<4x8x5xf32> to vector<1x8x5xf32>
    %100 = vector.shape_cast %99 : vector<1x8x5xf32> to vector<8x5xf32>
    %c1_67 = arith.constant 1 : index
    %c1_68 = arith.constant 1 : index
    %c0_69 = arith.constant 0 : index
    %c0_70 = arith.constant 0 : index
    %101 = vector.load %arg5[%c1_67, %c1_68, %c0_69, %c0_70] : memref<3x4x8x128xf32, #tpu.memory_space<vmem>>, vector<1x1x5x128xf32>
    %102 = vector.shape_cast %101 : vector<1x1x5x128xf32> to vector<5x128xf32>
    %cst_71 = arith.constant dense<0.000000e+00> : vector<8x128xf32>
    %103 = tpu.matmul %100, %102, %cst_71 {dimension_numbers = #tpu.dot_dimension_numbers<[1], [0], [0], [1], [0, 0, 1, 1], [], []>} : vector<8x5xf32>, vector<5x128xf32>, vector<8x128xf32> -> vector<8x128xf32>
    %104 = arith.addf %98, %103 : vector<8x128xf32>
    %105 = vector.extract_strided_slice %91 {offsets = [2, 0, 0], sizes = [1, 8, 5], strides = [1, 1, 1]} : vector<4x8x5xf32> to vector<1x8x5xf32>
    %106 = vector.shape_cast %105 : vector<1x8x5xf32> to vector<8x5xf32>
    %c1_72 = arith.constant 1 : index
    %c2_73 = arith.constant 2 : index
    %c0_74 = arith.constant 0 : index
    %c0_75 = arith.constant 0 : index
    %107 = vector.load %arg5[%c1_72, %c2_73, %c0_74, %c0_75] : memref<3x4x8x128xf32, #tpu.memory_space<vmem>>, vector<1x1x5x128xf32>
    %108 = vector.shape_cast %107 : vector<1x1x5x128xf32> to vector<5x128xf32>
    %cst_76 = arith.constant dense<0.000000e+00> : vector<8x128xf32>
    %109 = tpu.matmul %106, %108, %cst_76 {dimension_numbers = #tpu.dot_dimension_numbers<[1], [0], [0], [1], [0, 0, 1, 1], [], []>} : vector<8x5xf32>, vector<5x128xf32>, vector<8x128xf32> -> vector<8x128xf32>
    %110 = arith.addf %104, %109 : vector<8x128xf32>
    %111 = vector.extract_strided_slice %91 {offsets = [3, 0, 0], sizes = [1, 8, 5], strides = [1, 1, 1]} : vector<4x8x5xf32> to vector<1x8x5xf32>
    %112 = vector.shape_cast %111 : vector<1x8x5xf32> to vector<8x5xf32>
    %c1_77 = arith.constant 1 : index
    %c3_78 = arith.constant 3 : index
    %c0_79 = arith.constant 0 : index
    %c0_80 = arith.constant 0 : index
    %113 = vector.load %arg5[%c1_77, %c3_78, %c0_79, %c0_80] : memref<3x4x8x128xf32, #tpu.memory_space<vmem>>, vector<1x1x5x128xf32>
    %114 = vector.shape_cast %113 : vector<1x1x5x128xf32> to vector<5x128xf32>
    %cst_81 = arith.constant dense<0.000000e+00> : vector<8x128xf32>
    %115 = tpu.matmul %112, %114, %cst_81 {dimension_numbers = #tpu.dot_dimension_numbers<[1], [0], [0], [1], [0, 0, 1, 1], [], []>} : vector<8x5xf32>, vector<5x128xf32>, vector<8x128xf32> -> vector<8x128xf32>
    %116 = arith.addf %110, %115 : vector<8x128xf32>
    %c1_82 = arith.constant 1 : index
    %c0_83 = arith.constant 0 : index
    %c0_84 = arith.constant 0 : index
    %117 = vector.load %arg6[%c1_82, %c0_83, %c0_84] : memref<3x1x128xf32, #tpu.memory_space<vmem>>, vector<1x1x128xf32>
    %118 = vector.shape_cast %117 : vector<1x1x128xf32> to vector<1x128xf32>
    %119 = vector.broadcast %118 : vector<1x128xf32> to vector<8x128xf32>
    %120 = arith.addf %116, %119 : vector<8x128xf32>
    %c0_85 = arith.constant 0 : index
    %c1_86 = arith.constant 1 : index
    %c0_87 = arith.constant 0 : index
    %c0_88 = arith.constant 0 : index
    %121 = vector.load %arg7[%c0_85, %c1_86, %c0_87, %c0_88] : memref<1x3x8x128xf32, #tpu.memory_space<vmem>>, vector<1x1x8x128xf32>
    %122 = vector.shape_cast %121 : vector<1x1x8x128xf32> to vector<8x128xf32>
    %123 = vector.shape_cast %120 : vector<8x128xf32> to vector<1x1x8x128xf32>
    tpu.vector_store %arg7[%c0_85, %c1_86, %c0_87, %c0_88], %123 {strides = array<i32>} : memref<1x3x8x128xf32, #tpu.memory_space<vmem>>, vector<1x1x8x128xf32>,
    %c0_89 = arith.constant 0 : index
    %c0_90 = arith.constant 0 : index
    %c0_91 = arith.constant 0 : index
    %c8 = arith.constant 8 : index
    %124 = vector.load %arg2[%c0_89, %c0_90, %c0_91, %c8] : memref<1x4x8x16xf32, #tpu.memory_space<vmem>>, vector<1x4x8x8xf32>
    %125 = vector.shape_cast %124 : vector<1x4x8x8xf32> to vector<4x8x8xf32>
    %cst_92 = arith.constant dense<0.000000e+00> : vector<4x8xf32>
    %126 = vector.multi_reduction <add>, %125, %cst_92 [2] : vector<4x8x8xf32> to vector<4x8xf32>
    %127 = vector.shape_cast %126 : vector<4x8xf32> to vector<4x8x1xf32>
    %cst_93 = arith.constant dense<0.000000e+00> : vector<8x1xf32>
    %128 = vector.multi_reduction <add>, %127, %cst_93 [0] : vector<4x8x1xf32> to vector<8x1xf32>
    %129 = vector.shape_cast %128 : vector<8x1xf32> to vector<1x8x1xf32>
    %cst_94 = arith.constant 3.125000e-02 : f32
    %130 = vector.broadcast %cst_94 : f32 to vector<1x8x1xf32>
    %131 = arith.mulf %129, %130 : vector<1x8x1xf32>
    %132 = vector.broadcast %131 : vector<1x8x1xf32> to vector<4x8x8xf32>
    %133 = arith.subf %125, %132 : vector<4x8x8xf32>
    %134 = arith.mulf %133, %133 : vector<4x8x8xf32>
    %cst_95 = arith.constant dense<0.000000e+00> : vector<4x8xf32>
    %135 = vector.multi_reduction <add>, %134, %cst_95 [2] : vector<4x8x8xf32> to vector<4x8xf32>
    %136 = vector.shape_cast %135 : vector<4x8xf32> to vector<4x8x1xf32>
    %cst_96 = arith.constant dense<0.000000e+00> : vector<8x1xf32>
    %137 = vector.multi_reduction <add>, %136, %cst_96 [0] : vector<4x8x1xf32> to vector<8x1xf32>
    %138 = vector.shape_cast %137 : vector<8x1xf32> to vector<1x8x1xf32>
    %cst_97 = arith.constant 3.125000e-02 : f32
    %139 = vector.broadcast %cst_97 : f32 to vector<1x8x1xf32>
    %140 = arith.mulf %138, %139 : vector<1x8x1xf32>
    %cst_98 = arith.constant 9.99999974E-6 : f32
    %141 = vector.broadcast %cst_98 : f32 to vector<1x8x1xf32>
    %142 = arith.addf %140, %141 : vector<1x8x1xf32>
    %143 = math.rsqrt %142 : vector<1x8x1xf32>
    %144 = vector.broadcast %143 : vector<1x8x1xf32> to vector<4x8x8xf32>
    %145 = arith.mulf %133, %144 : vector<4x8x8xf32>
    %c2_99 = arith.constant 2 : index
    %c0_100 = arith.constant 0 : index
    %c0_101 = arith.constant 0 : index
    %c0_102 = arith.constant 0 : index
    %146 = vector.load %arg3[%c2_99, %c0_100, %c0_101, %c0_102] : memref<3x4x1x8xf32, #tpu.memory_space<vmem>>, vector<1x4x1x8xf32>
    %147 = vector.shape_cast %146 : vector<1x4x1x8xf32> to vector<4x1x8xf32>
    %148 = vector.broadcast %147 : vector<4x1x8xf32> to vector<4x8x8xf32>
    %149 = arith.mulf %145, %148 : vector<4x8x8xf32>
    %c2_103 = arith.constant 2 : index
    %c0_104 = arith.constant 0 : index
    %c0_105 = arith.constant 0 : index
    %c0_106 = arith.constant 0 : index
    %150 = vector.load %arg4[%c2_103, %c0_104, %c0_105, %c0_106] : memref<3x4x1x8xf32, #tpu.memory_space<vmem>>, vector<1x4x1x8xf32>
    %151 = vector.shape_cast %150 : vector<1x4x1x8xf32> to vector<4x1x8xf32>
    %152 = vector.broadcast %151 : vector<4x1x8xf32> to vector<4x8x8xf32>
    %153 = arith.addf %149, %152 : vector<4x8x8xf32>
    %cst_107 = arith.constant 0.000000e+00 : f32
    %154 = vector.broadcast %cst_107 : f32 to vector<8x128xf32>
    %155 = vector.extract_strided_slice %153 {offsets = [0, 0, 0], sizes = [1, 8, 8], strides = [1, 1, 1]} : vector<4x8x8xf32> to vector<1x8x8xf32>
    %156 = vector.shape_cast %155 : vector<1x8x8xf32> to vector<8x8xf32>
    %c2_108 = arith.constant 2 : index
    %c0_109 = arith.constant 0 : index
    %c0_110 = arith.constant 0 : index
    %c0_111 = arith.constant 0 : index
    %157 = vector.load %arg5[%c2_108, %c0_109, %c0_110, %c0_111] : memref<3x4x8x128xf32, #tpu.memory_space<vmem>>, vector<1x1x8x128xf32>
    %158 = vector.shape_cast %157 : vector<1x1x8x128xf32> to vector<8x128xf32>
    %cst_112 = arith.constant dense<0.000000e+00> : vector<8x128xf32>
    %159 = tpu.matmul %156, %158, %cst_112 {dimension_numbers = #tpu.dot_dimension_numbers<[1], [0], [0], [1], [0, 0, 1, 1], [], []>} : vector<8x8xf32>, vector<8x128xf32>, vector<8x128xf32> -> vector<8x128xf32>
    %160 = arith.addf %154, %159 : vector<8x128xf32>
    %161 = vector.extract_strided_slice %153 {offsets = [1, 0, 0], sizes = [1, 8, 8], strides = [1, 1, 1]} : vector<4x8x8xf32> to vector<1x8x8xf32>
    %162 = vector.shape_cast %161 : vector<1x8x8xf32> to vector<8x8xf32>
    %c2_113 = arith.constant 2 : index
    %c1_114 = arith.constant 1 : index
    %c0_115 = arith.constant 0 : index
    %c0_116 = arith.constant 0 : index
    %163 = vector.load %arg5[%c2_113, %c1_114, %c0_115, %c0_116] : memref<3x4x8x128xf32, #tpu.memory_space<vmem>>, vector<1x1x8x128xf32>
    %164 = vector.shape_cast %163 : vector<1x1x8x128xf32> to vector<8x128xf32>
    %cst_117 = arith.constant dense<0.000000e+00> : vector<8x128xf32>
    %165 = tpu.matmul %162, %164, %cst_117 {dimension_numbers = #tpu.dot_dimension_numbers<[1], [0], [0], [1], [0, 0, 1, 1], [], []>} : vector<8x8xf32>, vector<8x128xf32>, vector<8x128xf32> -> vector<8x128xf32>
    %166 = arith.addf %160, %165 : vector<8x128xf32>
    %167 = vector.extract_strided_slice %153 {offsets = [2, 0, 0], sizes = [1, 8, 8], strides = [1, 1, 1]} : vector<4x8x8xf32> to vector<1x8x8xf32>
    %168 = vector.shape_cast %167 : vector<1x8x8xf32> to vector<8x8xf32>
    %c2_118 = arith.constant 2 : index
    %c2_119 = arith.constant 2 : index
    %c0_120 = arith.constant 0 : index
    %c0_121 = arith.constant 0 : index
    %169 = vector.load %arg5[%c2_118, %c2_119, %c0_120, %c0_121] : memref<3x4x8x128xf32, #tpu.memory_space<vmem>>, vector<1x1x8x128xf32>
    %170 = vector.shape_cast %169 : vector<1x1x8x128xf32> to vector<8x128xf32>
    %cst_122 = arith.constant dense<0.000000e+00> : vector<8x128xf32>
    %171 = tpu.matmul %168, %170, %cst_122 {dimension_numbers = #tpu.dot_dimension_numbers<[1], [0], [0], [1], [0, 0, 1, 1], [], []>} : vector<8x8xf32>, vector<8x128xf32>, vector<8x128xf32> -> vector<8x128xf32>
    %172 = arith.addf %166, %171 : vector<8x128xf32>
    %173 = vector.extract_strided_slice %153 {offsets = [3, 0, 0], sizes = [1, 8, 8], strides = [1, 1, 1]} : vector<4x8x8xf32> to vector<1x8x8xf32>
    %174 = vector.shape_cast %173 : vector<1x8x8xf32> to vector<8x8xf32>
    %c2_123 = arith.constant 2 : index
    %c3_124 = arith.constant 3 : index
    %c0_125 = arith.constant 0 : index
    %c0_126 = arith.constant 0 : index
    %175 = vector.load %arg5[%c2_123, %c3_124, %c0_125, %c0_126] : memref<3x4x8x128xf32, #tpu.memory_space<vmem>>, vector<1x1x8x128xf32>
    %176 = vector.shape_cast %175 : vector<1x1x8x128xf32> to vector<8x128xf32>
    %cst_127 = arith.constant dense<0.000000e+00> : vector<8x128xf32>
    %177 = tpu.matmul %174, %176, %cst_127 {dimension_numbers = #tpu.dot_dimension_numbers<[1], [0], [0], [1], [0, 0, 1, 1], [], []>} : vector<8x8xf32>, vector<8x128xf32>, vector<8x128xf32> -> vector<8x128xf32>
    %178 = arith.addf %172, %177 : vector<8x128xf32>
    %c2_128 = arith.constant 2 : index
    %c0_129 = arith.constant 0 : index
    %c0_130 = arith.constant 0 : index
    %179 = vector.load %arg6[%c2_128, %c0_129, %c0_130] : memref<3x1x128xf32, #tpu.memory_space<vmem>>, vector<1x1x128xf32>
    %180 = vector.shape_cast %179 : vector<1x1x128xf32> to vector<1x128xf32>
    %181 = vector.broadcast %180 : vector<1x128xf32> to vector<8x128xf32>
    %182 = arith.addf %178, %181 : vector<8x128xf32>
    %c0_131 = arith.constant 0 : index
    %c2_132 = arith.constant 2 : index
    %c0_133 = arith.constant 0 : index
    %c0_134 = arith.constant 0 : index
    %183 = vector.load %arg7[%c0_131, %c2_132, %c0_133, %c0_134] : memref<1x3x8x128xf32, #tpu.memory_space<vmem>>, vector<1x1x8x128xf32>
    %184 = vector.shape_cast %183 : vector<1x1x8x128xf32> to vector<8x128xf32>
    %185 = vector.shape_cast %182 : vector<8x128xf32> to vector<1x1x8x128xf32>
    tpu.vector_store %arg7[%c0_131, %c2_132, %c0_133, %c0_134], %185 {strides = array<i32>} : memref<1x3x8x128xf32, #tpu.memory_space<vmem>>, vector<1x1x8x128xf32>,
    return
  }
  func.func @transform_0(%arg0: i32, %arg1: i32) -> (i32, i32, i32, i32) {
    %c0_i32 = arith.constant 0 : i32
    %c0_i32_0 = arith.constant 0 : i32
    %c0_i32_1 = arith.constant 0 : i32
    return %arg0, %c0_i32, %arg1, %c0_i32_0 : i32, i32, i32, i32
  }
  func.func @transform_1(%arg0: i32, %arg1: i32) -> (i32, i32, i32, i32) {
    %c0_i32 = arith.constant 0 : i32
    %c0_i32_0 = arith.constant 0 : i32
    %c0_i32_1 = arith.constant 0 : i32
    %c0_i32_2 = arith.constant 0 : i32
    %c0_i32_3 = arith.constant 0 : i32
    return %c0_i32, %c0_i32_0, %c0_i32_1, %c0_i32_2 : i32, i32, i32, i32
  }
  func.func @transform_2(%arg0: i32, %arg1: i32) -> (i32, i32, i32, i32) {
    %c0_i32 = arith.constant 0 : i32
    %c0_i32_0 = arith.constant 0 : i32
    %c0_i32_1 = arith.constant 0 : i32
    %c0_i32_2 = arith.constant 0 : i32
    %c0_i32_3 = arith.constant 0 : i32
    return %c0_i32, %c0_i32_0, %c0_i32_1, %c0_i32_2 : i32, i32, i32, i32
  }
  func.func @transform_3(%arg0: i32, %arg1: i32) -> (i32, i32, i32, i32) {
    %c0_i32 = arith.constant 0 : i32
    %c0_i32_0 = arith.constant 0 : i32
    %c0_i32_1 = arith.constant 0 : i32
    %c0_i32_2 = arith.constant 0 : i32
    %c0_i32_3 = arith.constant 0 : i32
    return %c0_i32, %c0_i32_0, %c0_i32_1, %c0_i32_2 : i32, i32, i32, i32
  }
  func.func @transform_4(%arg0: i32, %arg1: i32) -> (i32, i32, i32) {
    %c0_i32 = arith.constant 0 : i32
    %c0_i32_0 = arith.constant 0 : i32
    %c0_i32_1 = arith.constant 0 : i32
    %c0_i32_2 = arith.constant 0 : i32
    return %c0_i32, %c0_i32_0, %c0_i32_1 : i32, i32, i32
  }
  func.func @transform_5(%arg0: i32, %arg1: i32) -> (i32, i32, i32, i32) {
    %c0_i32 = arith.constant 0 : i32
    %c0_i32_0 = arith.constant 0 : i32
    %c0_i32_1 = arith.constant 0 : i32
    return %arg0, %c0_i32, %arg1, %c0_i32_0 : i32, i32, i32, i32
  }
}

</mosaic_0001>

<bundles_post_ra>
// kernel: tpu_custom_call.1
= control target key start
LH: loop header
LB: loop body
LE: loop exit
PB: predicated region body
PF: predicated region fallthrough
CT: control target
= control target key end

     0   :  { %10 = vsyncpa [#allocation3], 0  ;;  %s2919_s0 = inlined_call_operand.hbm [shape: f32[2,4,8,16], index: 0, kind: input, shape index: {}]   ;;  %s2920_s1 = inlined_call_operand.hbm [shape: f32[3,4,1,8], index: 1, kind: input, shape index: {}]   ;;  %s2921_s2 = inlined_call_operand.hbm [shape: f32[3,4,1,8], index: 2, kind: input, shape index: {}]   ;;  %s2922_s3 = inlined_call_operand.hbm [shape: f32[3,4,8,128], index: 3, kind: input, shape index: {}]   ;;  %s2923_s4 = inlined_call_operand.vmem [shape: f32[3,1,128], index: 4, kind: input, shape index: {}]   ;;  %s2924_s5 = inlined_call_operand.hbm [shape: f32[2,3,8,128], index: 5, kind: output, shape index: {}]  }
   0x1   :  { %12 = vsyncpa [#allocation3 + $0x1], 0 }
   0x2   :  { %13 = vsyncpa [#allocation6], 0 }
   0x3   :  { %14 = vsyncpa [#allocation9], 0 }
   0x4   :  { %15 = vsyncpa [#allocation4], 0 }
   0x5   :  { %17 = vsyncpa [#allocation4 + $0x1], 0  ;;  %s2374_s18 = smov 0   ;;  %s2376_s19 = smov 0  }
   0x6   :  { %s2378_s20 = smov 0   ;;  %s2380_s21 = smov 0  }
   0x7   :  { %s2382_s22 = smov 0   ;;  %s2384_s23 = smov 0  }
   0x8 LB: > { %2931 = sst [smem:[#allocation15_spill]] %s2306_s18  ;;  %s1856_s24 = sadd.s32 4294967295, %s2326_s23   ;;  %s2326_s23 = sphi %s2384_s23, %s23_s23   ;;  %s2322_s22 = sphi %s2382_s22, %s2954_s22   ;;  %s2318_s21 = sphi %s2380_s21, %s2953_s21   ;;  %s2314_s20 = sphi %s2378_s20, %s2952_s20   ;;  %s2310_s19 = sphi %s2376_s19, %s2951_s19   ;;  %s2306_s18 = sphi %s2374_s18, %s2950_s18  }
   0x9   : > { %s1857_s25 = sadd.s32 4294967294, %s2326_s23   ;;  %p57_p0 = scmp.ne.s32.totalorder %s2310_s19, %s2306_s18 }
   0xa   : > { %p2408_p1 = scmp.eq.s32.totalorder %s1856_s24, 0  ;;  %p2412_p2 = scmp.eq.s32.totalorder %s1856_s24, 1 }
   0xb   : > { %p173_p3 = scmp.eq.s32.totalorder %s1857_s25, 1  ;;  %p1858_p5 = scmp.ge.s32.totalorder %s2326_s23, 1 }
   0xc   : > { %s2932_s26 = scalar_select %p2408_p1, 1, 0 }
   0xd   : > { %s2933_s27 = scalar_select %p2412_p2, 1, 0 }
   0xe   : > { %p2418_p4 = por %p2408_p1, %p57_p0  ;;  %p2423_p6 = por %p173_p3, %p57_p0 }
   0xf   : > { %p180_p7 = scmp.lt.s32.totalorder %s2326_s23, 3  ;;  %s2328_s6 = smov [#allocation5]  }
  0x10   : > { %s2934_s28 = scalar_select %p2418_p4, 1, 0 }
  0x11   : > { %s2935_s29 = scalar_select %p2423_p6, 1, 0 }
  0x12   : > { %p2428_p8 = pnand %p1858_p5, %p180_p7  ;;  %s192_s7 = sshll.u32 %s2328_s6, 4  ;;  %s2432_s7 = int_to_ptr.vmem [resolvable:$true] %s192_s7 }
  0x13   : > { %2936 = sst [smem:[#allocation16_spill]] %s2935_s29  ;;  %s2329_s9 = smov [#allocation7]  }
  0x14   : > { %s2937_s30 = scalar_select %p2428_p8, 1, 0 }
  0x15   : > { %p2028_p9 = pneg %p2428_p8  ;;  %s205_s10 = sshll.u32 %s2329_s9, 4  ;;  %s2443_s10 = int_to_ptr.vmem [resolvable:$true] %s205_s10 }
  0x16   : > { %s2330_s11 = smov [#allocation8]   ;;  %s2122_s15 = scalar_lea.hbm %s2920_s1, 192 }
  0x17   : > { %p2439_p11 = pnand %p2028_p9, %p2408_p1  ;;  %s2445_s12 = sshll.u32 %s2330_s11, 4  ;;  %s219_s12 = int_to_ptr.vmem [resolvable:$true] %s2445_s12 }
  0x18   : > { %p2123_p12 = scmp.ne.s32.totalorder %s2920_s1, %s2122_s15  ;;  %p2129_p5 = scmp.lt.u32.totalorder %s2122_s15, %s2920_s1 }
  0x19   : > { %p2455_p13 = pneg %p2439_p11 }
  0x1b   : > { %p2125_p0 = pnand %p2455_p13, %p2123_p12 }
  0x1d   : > { %p2126_p3 = pneg %p2125_p0 }
  0x1f   : > { %p2131_p7 = pnand %p2129_p5, %p2126_p3 }
  0x21   : > { %2134 = shalt.err (!%p2131_p7)
}
  0x22   : > { %s2135_s9 = scalar_lea.vmem %s2432_s7, 192  ;;  %p2143_p1 = scmp.lt.s32.totalorder %s2432_s7, %s2432_s7 }
  0x23   : > { %p2136_p9 = scmp.ne.s32.totalorder %s2432_s7, %s2135_s9  ;;  %p2144_p4 = scmp.lt.s32.totalorder %s2135_s9, %s2135_s9 }
  0x25   : > { %p2138_p10 = pnand %p2136_p9, %p2455_p13  ;;  %p2145_p12 = por %p2144_p4, %p2143_p1 }
  0x27   : > { %p2139_p6 = pneg %p2138_p10 }
  0x29   : > { %p2146_p0 = pnand %p2145_p12, %p2139_p6 }
  0x2b   : > { %2149 = shalt.err (!%p2146_p0)
}
  0x2c   : > { %s2331_s11 = smov 16   ;;  %s2332_s13 = smov 1  }
  0x2d   : > { %2031 = dma.hbm_to_vmem [thread:$0]  (!%p2439_p11), %s2920_s1, 192, %s2432_s7, [#allocation6], %s2331_s11, %s2331_s11, %s2332_s13  }
  0x2e   : > { %s2150_s25 = scalar_lea.hbm %s2921_s2, 192 }
  0x2f   : > { %p2151_p1 = scmp.ne.s32.totalorder %s2921_s2, %s2150_s25  ;;  %p2157_p10 = scmp.lt.u32.totalorder %s2150_s25, %s2921_s2 }
  0x31   : > { %p2153_p4 = pnand %p2151_p1, %p2455_p13 }
  0x33   : > { %p2154_p6 = pneg %p2153_p4 }
  0x35   : > { %p2159_p3 = pnand %p2157_p10, %p2154_p6 }
  0x37   : > { %2162 = shalt.err (!%p2159_p3)
}
  0x38   : > { %s2163_s7 = scalar_lea.vmem %s2443_s10, 192  ;;  %p2171_p12 = scmp.lt.s32.totalorder %s2443_s10, %s2443_s10 }
  0x39   : > { %p2164_p5 = scmp.ne.s32.totalorder %s2443_s10, %s2163_s7  ;;  %p2172_p0 = scmp.lt.s32.totalorder %s2163_s7, %s2163_s7 }
  0x3b   : > { %p2166_p7 = pnand %p2164_p5, %p2455_p13  ;;  %p2173_p1 = por %p2172_p0, %p2171_p12 }
  0x3d   : > { %p2167_p9 = pneg %p2166_p7 }
  0x3f   : > { %p2174_p4 = pnand %p2173_p1, %p2167_p9 }
  0x41   : > { %2177 = shalt.err (!%p2174_p4)
}
  0x42   : > { %2034 = dma.hbm_to_vmem [thread:$0]  (!%p2439_p11), %s2921_s2, 192, %s2443_s10, [#allocation6], %s2331_s11, %s2331_s11, %s2332_s13  }
  0x43   : > { %s2178_s16 = scalar_lea.hbm %s2922_s3, 1536 }
  0x44   : > { %p2179_p6 = scmp.ne.s32.totalorder %s2922_s3, %s2178_s16  ;;  %p2185_p5 = scmp.lt.u32.totalorder %s2178_s16, %s2922_s3 }
  0x46   : > { %p2181_p10 = pnand %p2179_p6, %p2455_p13 }
  0x48   : > { %p2182_p3 = pneg %p2181_p10 }
  0x4a   : > { %p2187_p7 = pnand %p2185_p5, %p2182_p3 }
  0x4c   : > { %2190 = shalt.err (!%p2187_p7)
}
  0x4d   : > { %s2191_s7 = scalar_lea.vmem %s219_s12, 1536  ;;  %p2199_p1 = scmp.lt.s32.totalorder %s219_s12, %s219_s12 }
  0x4e   : > { %p2192_p9 = scmp.ne.s32.totalorder %s219_s12, %s2191_s7  ;;  %p2200_p4 = scmp.lt.s32.totalorder %s2191_s7, %s2191_s7 }
  0x50   : > { %p2194_p12 = pnand %p2192_p9, %p2455_p13  ;;  %p2201_p8 = por %p2200_p4, %p2199_p1 }
  0x52   : > { %p2195_p0 = pneg %p2194_p12 }
  0x54   : > { %p2202_p2 = pnand %p2201_p8, %p2195_p0 }
  0x56   : > { %2205 = shalt.err (!%p2202_p2)
}
  0x57   : > { %s2333_s10 = smov 128   ;;  %s2334_s24 = smov 8  }
  0x58   : > { %2037 = dma.hbm_to_vmem [thread:$0]  (!%p2439_p11), %s2922_s3, 1536, %s219_s12, [#allocation9], %s2333_s10, %s2333_s10, %s2334_s24  }
  0x59   : > { %s44_s18 = sadd.s32 1, %s2314_s20  ;;  %s35_s29 = sadd.s32 1, %s2322_s22 }
  0x5a   : > { %p51_p2 = scmp.ne.s32.totalorder %s2314_s20, %s2310_s19  ;;  %p37_p8 = scmp.ge.s32.totalorder %s35_s29, 2 }
  0x5b   : > { %p52_p13 = scmp.eq.s32.totalorder %s2326_s23, 0  ;;  %p2940_p6 = scmp.ne.s32.totalorder %s2933_s27, 0 }
  0x5c   : > { %p2049_p3 = scmp.lt.s32.totalorder %s2326_s23, 2  ;;  %s2956_s29 = smov (%p37_p8, %s35_s29), 0 }
  0x5d   : > { %p2528_p10 = por %p2940_p6, %p51_p2  ;;  %p53_p5 = por %p52_p13, %p51_p2 }
  0x5e   : > { %s235_s8 = sand.u32 1, %s2314_s20   ;;  %s39_s15 = ssub.s32 %s2322_s22, %s2956_s29 }
  0x5f   : > { %p42_p7 = scmp.eq.s32.totalorder %s39_s15, 0  ;;  %s1863_s12 = sshll.u32 %s235_s8, 5 }
  0x60   : > { %s1925_s16 = sshll.u32 %s2322_s22, 9  ;;  %s239_s9 = scalar_lea.vmem [#allocation2], %s1863_s12 }
  0x61   : > { %s2540_s17 = scalar_select %p42_p7, %s2314_s20, %s44_s18  }
  0x62   : > { %s2545_s27 = scalar_lea.hbm %s2919_s0, %s1925_s16  ;;  %s247_s7 = sshll.u32 %s239_s9, 4  ;;  %s2547_s7 = int_to_ptr.vmem [resolvable:$true] %s247_s7 }
  0x63   : > { %p2551_p11 = pnand %p2049_p3, %p53_p5  ;;  %s2555_s13 = scalar_lea.sflag [#allocation3], %s235_s8 }
  0x64   : > { %s2206_s18 = scalar_lea.hbm %s2545_s27, 512  ;;  %s2211_s16 = scalar_lea.hbm %s2919_s0, 1024 }
  0x65   : > { %p2207_p9 = scmp.ne.s32.totalorder %s2545_s27, %s2206_s18  ;;  %p2208_p12 = pneg %p2551_p11 }
  0x66   : > { %p2212_p4 = scmp.lt.u32.totalorder %s2545_s27, %s2919_s0  ;;  %p2213_p2 = scmp.lt.u32.totalorder %s2211_s16, %s2206_s18 }
  0x67   : > { %p2209_p0 = pnand %p2208_p12, %p2207_p9  ;;  %p2215_p13 = scmp.lt.u32.totalorder %s2206_s18, %s2545_s27 }
  0x68   : > { %p2214_p8 = por %p2213_p2, %p2212_p4 }
  0x69   : > { %p2210_p1 = pneg %p2209_p0 }
  0x6a   : > { %p2216_p6 = por %p2215_p13, %p2214_p8 }
  0x6c   : > { %p2217_p3 = pnand %p2216_p6, %p2210_p1 }
  0x6e   : > { %2220 = shalt.err (!%p2217_p3)
}
  0x6f   : > { %s2221_s8 = scalar_lea.vmem %s2547_s7, 512  ;;  %s2335_s9 = smov [#allocation2]  }
  0x70   : > { %p2222_p5 = scmp.ne.s32.totalorder %s2547_s7, %s2221_s8  ;;  %s2226_s15 = sshll.u32 %s2335_s9, 4  ;;  %s2227_s15 = int_to_ptr.vmem [resolvable:$false] %s2226_s15 }
  0x71   : > { %s2228_s12 = scalar_lea.vmem %s2227_s15, 1024  ;;  %p2229_p0 = scmp.lt.s32.totalorder %s2547_s7, %s2227_s15 }
  0x72   : > { %p2224_p7 = pnand %p2222_p5, %p2208_p12  ;;  %p2230_p4 = scmp.lt.s32.totalorder %s2228_s12, %s2221_s8 }
  0x74   : > { %p2225_p9 = pneg %p2224_p7  ;;  %p2231_p2 = por %p2230_p4, %p2229_p0 }
  0x76   : > { %p2232_p8 = pnand %p2231_p2, %p2225_p9 }
  0x78   : > { %2235 = shalt.err (!%p2232_p8)
}
  0x79   : > { %2041 = dma.hbm_to_vmem [thread:$0]  (!%p2551_p11), %s2545_s27, 512, %s2547_s7, %s2555_s13, %s2333_s10, %s2333_s10, %s2334_s24  }
  0x7a   : > { %p2943_p12 = scmp.ne.s32.totalorder %s2937_s30, 0 }
  0x7b   : > { %s2589_s18 = sand.u32 (!%p2943_p12), 1, %s2310_s19   ;;  %p2944_p1 = scmp.ne.s32.totalorder (!%p2943_p12), %s2934_s28, 0 }
  0x7c   : > { %259 = sbr.rel (%p2943_p12) target bundleno = 1124 (0x464), region = 40  ;;  %s1867_s16 = sshll.u32 (!%p2943_p12), %s2589_s18, 5 }
  0x7d   : > { %s262_s25 = scalar_lea.sflag (!%p2943_p12), [#allocation3], %s2589_s18  ;;  %s265_s6 = scalar_lea.vmem (!%p2943_p12), [#allocation2], %s1867_s16 }
  0x83   : > { %2289 = dma.done.wait (%p2944_p1), %s262_s25, 512  }
  0x84   : > { %2291 = vsyncadd (%p2944_p1), %s262_s25, 4294966784  ;;  %p2945_p13 = scmp.ne.s32.totalorder %s2932_s26, 0 }
  0x86   : > { %2293 = dma.done.wait (%p2945_p13), [#allocation6], 384  }
  0x87   : > { %2295 = vsyncadd (%p2945_p13), [#allocation6], 4294966912 }
  0x88   : > { %2297 = dma.done.wait (%p2945_p13), [#allocation9], 1536  }
  0x89   : > { %2299 = vsyncadd (%p2945_p13), [#allocation9], 4294965760  ;;  %v2605_v0 = vld [vmem:[%s265_s6] sm:$0xff]  ;;  %v2607_v1 = vld [vmem:[%s265_s6 + $0x10] sm:$0xff]  ;;  %s2336_s30 = smov 125   ;;  %s2337_s26 = smov 120  }
  0x8a   : > { %750 = vrot.lane.b32.xlu0 %v2605_v0, %s2336_s30  ;;  %754 = vrot.lane.b32.xlu1 %v2607_v1, %s2336_s30  ;;  %v2613_v2 = vld [vmem:[%s265_s6 + $0x8] sm:$0xff]  ;;  %v2615_v3 = vld [vmem:[%s265_s6 + $0x18] sm:$0xff]  ;;  %vm762_vm0 = vcmask 39936   ;;  %vm1261_vm1 = vcmask 64512   ;;  %vm308_vm2 = vcmask 23552   ;;  %s2338_s28 = smov 3  }
  0x8b   : > { %v312_v18 = vsel %vm308_vm2, %v2613_v2, 0.0  ;;  %v309_v19 = vsel %vm308_vm2, %v2605_v0, 0.0  ;;  %v315_v20 = vsel %vm308_vm2, %v2607_v1, 0.0  ;;  %v318_v21 = vsel %vm308_vm2, %v2615_v3, 0.0  ;;  %v1889_v22 = vld [vmem:[#allocation5 + $0x5] ss:$0 sm:$0xff] }
  0x8c   : > { %v1893_v23 = vld [vmem:[#allocation7 + $0x5] ss:$0 sm:$0xff]  ;;  %v1890_v24 = vld [vmem:[#allocation5 + $0x6] ss:$0 sm:$0xff]  ;;  %v1888_v25 = vld [vmem:[#allocation5 + $0x4] ss:$0 sm:$0xff] }
  0x8d   : > { %v1892_v26 = vld [vmem:[#allocation7 + $0x4] ss:$0 sm:$0xff]  ;;  %s2339_s10 = smov 8   ;;  %vm425_vm3 = vcmask 1042432   ;;  %vm2341_vm4 = vmmov 0   ;;  %vm916_vm5 = vcmask 1044480  }
  0x8e   : > { %752 = vrot.lane.b32.xlu0 %v2613_v2, %s2336_s30  ;;  %756 = vrot.lane.b32.xlu1 %v2615_v3, %s2336_s30  ;;  %s2010_s24 = smul.u32 24, %s2589_s18 }
  0x8f   : > { %s2011_s15 = smul.u32 384, %s2318_s21  ;;  %s2342_s21 = smov [#allocation10]  }
  0x90   : > { %s2851_s11 = scalar_lea.vmem [#allocation10], %s2010_s24  ;;  %s2240_s24 = sshll.u32 %s2342_s21, 4  ;;  %s2241_s24 = int_to_ptr.vmem [resolvable:$false] %s2240_s24 }
  0x91   : > { %s1742_s9 = sshll.u32 %s2851_s11, 4  ;;  %s2242_s27 = scalar_lea.vmem %s2241_s24, 768  ;;  %s2863_s9 = int_to_ptr.vmem [resolvable:$true] %s1742_s9 }
  0x92   : > { %1249 = vrot.lane.b32.xlu0 %v2605_v0, %s2337_s26  ;;  %1251 = vrot.lane.b32.xlu1 %v2613_v2, %s2337_s26  ;;  %p2243_p5 = scmp.lt.s32.totalorder %s2863_s9, %s2241_s24 }
  0x96   : > { %1253 = vrot.lane.b32.xlu0 %v2607_v1, %s2337_s26  ;;  %1255 = vrot.lane.b32.xlu1 %v2615_v3, %s2337_s26 }
  0xfc   : > { %v751_v4 = vpop.permute.xlu0 %750  ;;  %v755_v5 = vpop.permute.xlu1 %754 }
  0xfd   : > { %v763_v6 = vsel %vm762_vm0, %v751_v4, 0.0  ;;  %v769_v7 = vsel %vm762_vm0, %v755_v5, 0.0 }
  0xfe   : > { %764 = vadd.xlane.f32.xlu0 %v763_v6 }
 0x100   : > { %v753_v8 = vpop.permute.xlu0 %752  ;;  %v757_v9 = vpop.permute.xlu1 %756 }
 0x101   : > { %v766_v10 = vsel %vm762_vm0, %v753_v8, 0.0  ;;  %v772_v11 = vsel %vm762_vm0, %v757_v9, 0.0  ;;  %v1891_v9 = vld [vmem:[#allocation5 + $0x7] ss:$0 sm:$0xff] }
 0x102   : > { %770 = vadd.xlane.f32.xlu0 %v769_v7  ;;  %767 = vadd.xlane.f32.xlu1 %v766_v10  ;;  %v1894_v10 = vld [vmem:[#allocation7 + $0x6] ss:$0 sm:$0xff] }
 0x104   : > { %v1250_v12 = vpop.permute.xlu0 %1249  ;;  %v1252_v13 = vpop.permute.xlu1 %1251 }
 0x105   : > { %v1262_v14 = vsel %vm1261_vm1, %v1250_v12, 0.0  ;;  %v1265_v15 = vsel %vm1261_vm1, %v1252_v13, 0.0  ;;  %v1908_v12 = vld [vmem:[#allocation5 + $0x9] ss:$0 sm:$0xff]  ;;  %v1907_v13 = vld [vmem:[#allocation5 + $0x8] ss:$0 sm:$0xff] }
 0x106   : > { %773 = vadd.xlane.f32.xlu0 %v772_v11  ;;  %1263 = vadd.xlane.f32.xlu1 %v1262_v14  ;;  %v1895_v11 = vld [vmem:[#allocation7 + $0x7] ss:$0 sm:$0xff]  ;;  %v1912_v14 = vld [vmem:[#allocation7 + $0x9] ss:$0 sm:$0xff] }
 0x108   : > { %v1254_v16 = vpop.permute.xlu0 %1253  ;;  %v1256_v27 = vpop.permute.xlu1 %1255 }
 0x109   : > { %v1268_v17 = vsel %vm1261_vm1, %v1254_v16, 0.0  ;;  %v1271_v28 = vsel %vm1261_vm1, %v1256_v27, 0.0  ;;  %v1911_v16 = vld [vmem:[#allocation7 + $0x8] ss:$0 sm:$0xff] }
 0x10a   : > { %1266 = vadd.xlane.f32.xlu0 %v1265_v15  ;;  %1269 = vadd.xlane.f32.xlu1 %v1268_v17  ;;  %v1909_v15 = vld [vmem:[#allocation5 + $0xa] ss:$0 sm:$0xff] }
 0x10e   : > { %313 = vadd.xlane.f32.xlu1 %v312_v18  ;;  %310 = vadd.xlane.f32.xlu0 %v309_v19 }
 0x112   : > { %316 = vadd.xlane.f32.xlu0 %v315_v20 }
 0x116   : > { %319 = vadd.xlane.f32.xlu0 %v318_v21 }
 0x11f   : > { %852 = vrot.lane.b32.xlu1 %v1889_v22, %s2338_s28 }
 0x123   : > { %893 = vrot.lane.b32.xlu1 %v1893_v23, %s2338_s28 }
 0x127   : > { %854 = vrot.lane.b32.xlu1 %v1890_v24, %s2338_s28 }
 0x12c   : > { %850 = vrot.lane.b32.xlu0 %v1888_v25, %s2338_s28 }
 0x130   : > { %891 = vrot.lane.b32.xlu0 %v1892_v26, %s2338_s28 }
 0x14f   : > { %1272 = vadd.xlane.f32.xlu0 %v1271_v28 }
 0x18b   : > { %v765_v29 = vpop.xlane.xlu0 %764 }
 0x18f   : > { %v768_v30 = vpop.xlane.xlu1 %767  ;;  %v771_v31 = vpop.xlane.xlu0 %770 }
 0x190   : > { %v775_v32 = vadd.f32 %v768_v30, %v765_v29 }
 0x192   : > { %v776_v33 = vadd.f32 %v775_v32, %v771_v31 }
 0x193   : > { %v1264_v34 = vpop.xlane.xlu1 %1263  ;;  %v774_v35 = vpop.xlane.xlu0 %773 }
 0x194   : > { %v777_v36 = vadd.f32 %v776_v33, %v774_v35 }
 0x196   : > { %v778_v37 = vmul.f32 0.05, %v777_v36 }
 0x197   : > { %v1270_v38 = vpop.xlane.xlu1 %1269  ;;  %v1267_v39 = vpop.xlane.xlu0 %1266 }
 0x198   : > { %v2651_v40 = vsub.f32 %v2605_v0, %v778_v37  ;;  %v2654_v41 = vsub.f32 %v2613_v2, %v778_v37  ;;  %v2661_v44 = vsub.f32 %v2607_v1, %v778_v37  ;;  %v2668_v49 = vsub.f32 %v2615_v3, %v778_v37 }
 0x199   : > { %v1274_v55 = vadd.f32 %v1267_v39, %v1264_v34 }
 0x19a   : > { %v783_v42 = vmul.f32 %v2651_v40, %v2651_v40  ;;  %v784_v43 = vmul.f32 %v2654_v41, %v2654_v41  ;;  %v785_v48 = vmul.f32 %v2661_v44, %v2661_v44  ;;  %v786_v52 = vmul.f32 %v2668_v49, %v2668_v49 }
 0x19b   : > { %v314_v45 = vpop.xlane.xlu1 %313  ;;  %v311_v46 = vpop.xlane.xlu0 %310  ;;  %v1275_v57 = vadd.f32 %v1274_v55, %v1270_v38 }
 0x19c   : > { %791 = vrot.lane.b32.xlu1 %v783_v42, %s2336_s30  ;;  %793 = vrot.lane.b32.xlu0 %v784_v43, %s2336_s30  ;;  %v321_v47 = vadd.f32 %v314_v45, %v311_v46  ;;  %v1913_v46 = vld [vmem:[#allocation7 + $0xa] ss:$0 sm:$0xff] }
 0x19f   : > { %v317_v50 = vpop.xlane.xlu0 %316  ;;  %v2710_v18 = vpop.permute.xlu1 %852 }
 0x1a0   : > { %v322_v51 = vadd.f32 %v321_v47, %v317_v50  ;;  %795 = vrot.lane.b32.xlu1 %v785_v48, %s2336_s30  ;;  %v1914_v47 = vld [vmem:[#allocation7 + $0xb] ss:$0 sm:$0xff] }
 0x1a3   : > { %v320_v53 = vpop.xlane.xlu0 %319  ;;  %v2712_v20 = vpop.permute.xlu1 %893 }
 0x1a4   : > { %797 = vrot.lane.b32.xlu1 %v786_v52, %s2336_s30  ;;  %v323_v17 = vadd.f32 %v322_v51, %v320_v53 }
 0x1a6   : > { %v324_v19 = vmul.f32 0.083333336, %v323_v17 }
 0x1a7   : > { %v2674_v54 = vpop.permute.xlu0 %850  ;;  %v2722_v24 = vpop.permute.xlu1 %854 }
 0x1a8   : > { %v2715_v21 = vsub.f32 %v2613_v2, %v324_v19  ;;  %v2720_v23 = vsub.f32 %v2605_v0, %v324_v19  ;;  %v2740_v48 = vsub.f32 %v2615_v3, %v324_v19  ;;  %v2743_v50 = vsub.f32 %v2607_v1, %v324_v19 }
 0x1aa   : > { %v330_v22 = vmul.f32 %v2715_v21, %v2715_v21  ;;  %v329_v26 = vmul.f32 %v2720_v23, %v2720_v23  ;;  %v332_v51 = vmul.f32 %v2740_v48, %v2740_v48  ;;  %v331_v52 = vmul.f32 %v2743_v50, %v2743_v50 }
 0x1ab   : > { %v2676_v56 = vpop.permute.xlu0 %891 }
 0x1ac   : > { %v336_v25 = vsel %vm308_vm2, %v330_v22, 0.0  ;;  %v333_v28 = vsel %vm308_vm2, %v329_v26, 0.0  ;;  %v342_v53 = vsel %vm308_vm2, %v332_v51, 0.0  ;;  %v339_v55 = vsel %vm308_vm2, %v331_v52, 0.0 }
 0x1dc   : > { %v1273_v58 = vpop.xlane.xlu0 %1272 }
 0x1dd   : > { %v1276_v59 = vadd.f32 %v1275_v57, %v1273_v58 }
 0x1df   : > { %v1277_v60 = vmul.f32 0.03125, %v1276_v59 }
 0x1e1   : > { %v2679_v61 = vsub.f32 %v2613_v2, %v1277_v60  ;;  %v2682_v62 = vsub.f32 %v2605_v0, %v1277_v60  ;;  %v2689_v5 = vsub.f32 %v2615_v3, %v1277_v60  ;;  %v2692_v6 = vsub.f32 %v2607_v1, %v1277_v60  ;;  %v1910_v0 = vld [vmem:[#allocation5 + $0xb] ss:$0 sm:$0xff] }
 0x1e3   : > { %v1283_v63 = vmul.f32 %v2679_v61, %v2679_v61  ;;  %v1282_v4 = vmul.f32 %v2682_v62, %v2682_v62  ;;  %v1285_v7 = vmul.f32 %v2689_v5, %v2689_v5  ;;  %v1284_v8 = vmul.f32 %v2692_v6, %v2692_v6 }
 0x1e5   : > { %1292 = vrot.lane.b32.xlu1 %v1283_v63, %s2337_s26  ;;  %1290 = vrot.lane.b32.xlu0 %v1282_v4, %s2337_s26 }
 0x1e9   : > { %1296 = vrot.lane.b32.xlu1 %v1285_v7, %s2337_s26  ;;  %1294 = vrot.lane.b32.xlu0 %v1284_v8, %s2337_s26  ;;  %v421_v7 = vld [vmem:[#allocation8 + $0x8] sm:$0x7]  ;;  %v2340_v8 = vmov 0.0  }
 0x1ea   : > { %1950 = vmatprep.subr.mxu0 %v2340_v8  ;;  %1955 = vmatprep.subr.mxu1 %v2340_v8 }
 0x1eb   : > { %1951 = vmatpush3.msk.msra.mxu0 %vm425_vm3, %v421_v7  ;;  %1952 = vmatprep.mubr.msk.f32.mxu0 %vm2341_vm4, %v2340_v8  ;;  %v1872_v7 = vld [vmem:[#allocation5 + $0x1] ss:$0 sm:$0xff] }
 0x1ec   : > { %1957 = vmatprep.mubr.msk.f32.mxu1 %vm2341_vm4, %v2340_v8  ;;  %1960 = vmatprep.subr.mxu0 %v2340_v8 }
 0x1ed   : > { %856 = vrot.lane.b32.xlu1 %v1891_v9, %s2338_s28  ;;  %895 = vrot.lane.b32.xlu0 %v1894_v10, %s2338_s28  ;;  %v419_v9 = vld [vmem:[#allocation8] sm:$0x7] }
 0x1ee   : > { %1956 = vmatpush3.msk.msra.mxu1 %vm425_vm3, %v419_v9  ;;  %v1871_v9 = vld [vmem:[#allocation5] ss:$0 sm:$0xff] }
 0x1ef   : > { %1965 = vmatprep.subr.mxu1 %v2340_v8 }
 0x1f1   : > { %897 = vrot.lane.b32.xlu1 %v1895_v11, %s2338_s28  ;;  %1351 = vrot.lane.b32.xlu0 %v1908_v12, %s2339_s10  ;;  %s2236_s28 = scalar_lea.vmem %s2863_s9, 384 }
 0x1f2   : > { %p2237_p11 = scmp.ne.s32.totalorder %s2863_s9, %s2236_s28  ;;  %p2244_p7 = scmp.lt.s32.totalorder %s2242_s27, %s2236_s28 }
 0x1f4   : > { %p2238_p6 = pnand %p2237_p11, %p2528_p10  ;;  %p2245_p9 = por %p2244_p7, %p2243_p5 }
 0x1f5   : > { %1349 = vrot.lane.b32.xlu1 %v1907_v13, %s2339_s10  ;;  %1392 = vrot.lane.b32.xlu0 %v1912_v14, %s2339_s10 }
 0x1f6   : > { %p2239_p3 = pneg %p2238_p6 }
 0x1f8   : > { %p2246_p0 = pnand %p2245_p9, %p2239_p3 }
 0x1f9   : > { %1353 = vrot.lane.b32.xlu1 %v1909_v15, %s2339_s10  ;;  %1390 = vrot.lane.b32.xlu0 %v1911_v16, %s2339_s10 }
 0x20e   : > { %v792_v27 = vpop.permute.xlu1 %791  ;;  %v794_v31 = vpop.permute.xlu0 %793 }
 0x20f   : > { %v803_v2 = vsel %vm762_vm0, %v792_v27, 0.0  ;;  %v806_v32 = vsel %vm762_vm0, %v794_v31, 0.0 }
 0x212   : > { %v796_v29 = vpop.permute.xlu1 %795 }
 0x213   : > { %v809_v30 = vsel %vm762_vm0, %v796_v29, 0.0 }
 0x216   : > { %v798_v33 = vpop.permute.xlu1 %797 }
 0x217   : > { %v812_v34 = vsel %vm762_vm0, %v798_v33, 0.0 }
 0x218   : > { %337 = vadd.xlane.f32.xlu0 %v336_v25 }
 0x21d   : > { %334 = vadd.xlane.f32.xlu1 %v333_v28 }
 0x221   : > { %804 = vadd.xlane.f32.xlu1 %v803_v2 }
 0x225   : > { %810 = vadd.xlane.f32.xlu1 %v809_v30 }
 0x22e   : > { %1355 = vrot.lane.b32.xlu0 %v1910_v0, %s2339_s10 }
 0x24d   : > { %807 = vadd.xlane.f32.xlu0 %v806_v32 }
 0x251   : > { %813 = vadd.xlane.f32.xlu0 %v812_v34 }
 0x257   : > { %v1293_v35 = vpop.permute.xlu1 %1292  ;;  %v1291_v36 = vpop.permute.xlu0 %1290 }
 0x258   : > { %v1305_v37 = vsel %vm1261_vm1, %v1293_v35, 0.0  ;;  %v1302_v38 = vsel %vm1261_vm1, %v1291_v36, 0.0 }
 0x259   : > { %1306 = vadd.xlane.f32.xlu0 %v1305_v37  ;;  %1303 = vadd.xlane.f32.xlu1 %v1302_v38 }
 0x25b   : > { %v1297_v39 = vpop.permute.xlu1 %1296  ;;  %v1295_v42 = vpop.permute.xlu0 %1294 }
 0x25c   : > { %v1311_v43 = vsel %vm1261_vm1, %v1297_v39, 0.0  ;;  %v1308_v45 = vsel %vm1261_vm1, %v1295_v42, 0.0 }
 0x25d   : > { %1312 = vadd.xlane.f32.xlu0 %v1311_v43  ;;  %1309 = vadd.xlane.f32.xlu1 %v1308_v45 }
 0x25f   : > { %v896_v57 = vpop.permute.xlu0 %895  ;;  %v857_v58 = vpop.permute.xlu1 %856 }
 0x263   : > { %v2751_v59 = vpop.permute.xlu0 %1351  ;;  %v898_v3 = vpop.permute.xlu1 %897 }
 0x267   : > { %v2753_v60 = vpop.permute.xlu0 %1392  ;;  %v2755_v1 = vpop.permute.xlu1 %1349 }
 0x26b   : > { %v2757_v63 = vpop.permute.xlu0 %1390  ;;  %v1354_v4 = vpop.permute.xlu1 %1353 }
 0x26e   : > { %1394 = vrot.lane.b32.xlu1 %v1913_v46, %s2339_s10 }
 0x273   : > { %1396 = vrot.lane.b32.xlu0 %v1914_v47, %s2339_s10 }
 0x292   : > { %343 = vadd.xlane.f32.xlu0 %v342_v53  ;;  %340 = vadd.xlane.f32.xlu1 %v339_v55 }
 0x2a5   : > { %v338_v10 = vpop.xlane.xlu0 %337 }
 0x2a9   : > { %v1356_v13 = vpop.permute.xlu0 %1355 }
 0x2aa   : > { %v335_v11 = vpop.xlane.xlu1 %334 }
 0x2ab   : > { %v2764_v12 = vadd.f32 %v338_v10, %v335_v11  ;;  %v1876_v11 = vld [vmem:[#allocation7 + $0x1] ss:$0 sm:$0xff] }
 0x2ae   : > { %v805_v14 = vpop.xlane.xlu1 %804 }
 0x2b2   : > { %v811_v17 = vpop.xlane.xlu1 %810 }
 0x2da   : > { %v808_v15 = vpop.xlane.xlu0 %807 }
 0x2db   : > { %v815_v16 = vadd.f32 %v808_v15, %v805_v14 }
 0x2dd   : > { %v816_v19 = vadd.f32 %v815_v16, %v811_v17  ;;  %v1875_v16 = vld [vmem:[#allocation7] ss:$0 sm:$0xff]  ;;  %v1873_v17 = vld [vmem:[#allocation5 + $0x2] ss:$0 sm:$0xff] }
 0x2de   : > { %v814_v22 = vpop.xlane.xlu0 %813 }
 0x2df   : > { %v817_v25 = vadd.f32 %v816_v19, %v814_v22 }
 0x2e1   : > { %v818_v26 = vmul.f32 0.05, %v817_v25 }
 0x2e3   : > { %v819_v27 = vadd.f32 1e-05, %v818_v26 }
 0x2e5   : > { %2116 = vrsqrt.f32 %v819_v27  ;;  %v576_v27 = vld [vmem:[#allocation8 + $0x10] sm:$0x7] }
 0x2e6   : > { %v1304_v28 = vpop.xlane.xlu1 %1303  ;;  %v1307_v2 = vpop.xlane.xlu0 %1306 }
 0x2e7   : > { %v1314_v29 = vadd.f32 %v1307_v2, %v1304_v28 }
 0x2ea   : > { %v1310_v30 = vpop.xlane.xlu1 %1309  ;;  %v1313_v31 = vpop.xlane.xlu0 %1312 }
 0x2eb   : > { %v1315_v0 = vadd.f32 %v1314_v29, %v1310_v30  ;;  %v655_v29 = vld [vmem:[#allocation8 + $0x18] sm:$0x7]  ;;  %v1877_v30 = vld [vmem:[#allocation7 + $0x2] ss:$0 sm:$0xff] }
 0x2ed   : > { %v1316_v32 = vadd.f32 %v1315_v0, %v1313_v31  ;;  %v908_v0 = vld [vmem:[#allocation8 + $0x20] sm:$0x1f]  ;;  %v1069_v31 = vld [vmem:[#allocation8 + $0x30] sm:$0x1f] }
 0x2ef   : > { %v2117_v33 = vpop.eup %2116  ;;  %v1317_v34 = vmul.f32 0.03125, %v1316_v32 }
 0x2f0   : > { %v822_v35 = vmul.f32 %v2117_v33, %v2654_v41  ;;  %v821_v36 = vmul.f32 %v2117_v33, %v2651_v40  ;;  %v823_v37 = vmul.f32 %v2117_v33, %v2661_v44  ;;  %v824_v47 = vmul.f32 %v2117_v33, %v2668_v49 }
 0x2f1   : > { %v1318_v38 = vadd.f32 1e-05, %v1317_v34  ;;  %v1150_v34 = vld [vmem:[#allocation8 + $0x38] sm:$0x1f] }
 0x2f2   : > { %v863_v39 = vmul.f32 %v2710_v18, %v822_v35  ;;  %v862_v42 = vmul.f32 %v2674_v54, %v821_v36  ;;  %v864_v46 = vmul.f32 %v2722_v24, %v823_v37  ;;  %v865_v41 = vmul.f32 %v857_v58, %v824_v47  ;;  %v1395_v58 = vpop.permute.xlu1 %1394  ;;  %v1409_v35 = vld [vmem:[#allocation8 + $0x48] sm:$0xff]  ;;  %v1407_v37 = vld [vmem:[#allocation8 + $0x40] sm:$0xff] }
 0x2f3   : > { %2118 = vrsqrt.f32 %v1318_v38 }
 0x2f4   : > { %v904_v43 = vadd.f32 %v2712_v20, %v863_v39  ;;  %v903_v45 = vadd.f32 %v2676_v56, %v862_v42  ;;  %v905_v40 = vadd.f32 %v896_v57, %v864_v46  ;;  %v906_v44 = vadd.f32 %v898_v3, %v865_v41  ;;  %v1397_v3 = vpop.permute.xlu0 %1396  ;;  %v1561_v39 = vld [vmem:[#allocation8 + $0x50] sm:$0xff]  ;;  %v1639_v42 = vld [vmem:[#allocation8 + $0x58] sm:$0xff] }
 0x2f6   : > { %912 = vrot.lane.b32.xlu1 %v904_v43, %s2336_s30  ;;  %991 = vrot.lane.b32.xlu0 %v903_v45, %s2336_s30 }
 0x2fa   : > { %1071 = vrot.lane.b32.xlu1 %v905_v40, %s2336_s30 }
 0x2fd   : > { %v2119_v18 = vpop.eup %2118 }
 0x2fe   : > { %1152 = vrot.lane.b32.xlu1 %v906_v44, %s2336_s30  ;;  %v1322_v54 = vmul.f32 %v2119_v18, %v2692_v6  ;;  %v1323_v56 = vmul.f32 %v2119_v18, %v2689_v5  ;;  %v1321_v20 = vmul.f32 %v2119_v18, %v2679_v61  ;;  %v1320_v49 = vmul.f32 %v2119_v18, %v2682_v62  ;;  %s2868_s30 = scalar_lea.hbm %s2924_s5, %s2011_s15 }
 0x300   : > { %v1362_v24 = vmul.f32 %v2751_v59, %v1321_v20  ;;  %v1361_v51 = vmul.f32 %v2755_v1, %v1320_v49  ;;  %v1363_v52 = vmul.f32 %v1354_v4, %v1322_v54  ;;  %v1364_v53 = vmul.f32 %v1356_v13, %v1323_v56 }
 0x302   : > { %v1403_v55 = vadd.f32 %v2753_v60, %v1362_v24  ;;  %v1402_v57 = vadd.f32 %v2757_v63, %v1361_v51  ;;  %v1404_v5 = vadd.f32 %v1395_v58, %v1363_v52  ;;  %v1405_v61 = vadd.f32 %v1397_v3, %v1364_v53 }
 0x304   : > { %1411 = vrot.lane.b32.xlu0 %v1403_v55, %s2337_s26  ;;  %1486 = vrot.lane.b32.xlu1 %v1402_v57, %s2337_s26 }
 0x308   : > { %1563 = vrot.lane.b32.xlu0 %v1404_v5, %s2337_s26  ;;  %1641 = vrot.lane.b32.xlu1 %v1405_v61, %s2337_s26  ;;  %s1728_s26 = scalar_lea.sflag [#allocation4], %s2589_s18 }
 0x31f   : > { %v341_v62 = vpop.xlane.xlu1 %340  ;;  %v344_v59 = vpop.xlane.xlu0 %343 }
 0x320   : > { %v346_v6 = vadd.f32 %v2764_v12, %v341_v62  ;;  %v1874_v12 = vld [vmem:[#allocation5 + $0x3] ss:$0 sm:$0xff] }
 0x322   : > { %v347_v1 = vadd.f32 %v346_v6, %v344_v59 }
 0x324   : > { %v348_v60 = vmul.f32 0.083333336, %v347_v1  ;;  %v1905_v1 = vld [vmem:[%s2923_s4 + $0x1] ss:$0 sm:$0xff] }
 0x326   : > { %v349_v4 = vadd.f32 1e-05, %v348_v60 }
 0x328   : > { %2120 = vrsqrt.f32 %v349_v4 }
 0x332   : > { %v2121_v63 = vpop.eup %2120 }
 0x333   : > { %v352_v10 = vmul.f32 %v2121_v63, %v2715_v21  ;;  %v351_v13 = vmul.f32 %v2121_v63, %v2720_v23  ;;  %v353_v14 = vmul.f32 %v2121_v63, %v2743_v50  ;;  %v354_v15 = vmul.f32 %v2121_v63, %v2740_v48  ;;  %v1878_v21 = vld [vmem:[#allocation7 + $0x3] ss:$0 sm:$0xff]  ;;  %v910_v50 = vld [vmem:[#allocation8 + $0x28] sm:$0x1f] }
 0x335   : > { %v384_v19 = vmul.f32 %v1872_v7, %v352_v10  ;;  %v383_v22 = vmul.f32 %v1871_v9, %v351_v13  ;;  %v385_v28 = vmul.f32 %v1873_v17, %v353_v14  ;;  %v386_v2 = vmul.f32 %v1874_v12, %v354_v15 }
 0x337   : > { %v416_v25 = vadd.f32 %v1876_v11, %v384_v19  ;;  %v415_v26 = vadd.f32 %v1875_v16, %v383_v22  ;;  %v417_v23 = vadd.f32 %v1877_v30, %v385_v28  ;;  %v418_v48 = vadd.f32 %v1878_v21, %v386_v2  ;;  %v1920_v19 = vld [vmem:[%s2923_s4 + $0x2] ss:$0 sm:$0xff] }
 0x339   : > { %1953 = vmatmul.mubr.msk.f32.vlgmr.msra.gmra.mrb[0].mxu0 %vm308_vm2, %v416_v25  ;;  %1958 = vmatmul.mubr.msk.f32.vlgmr.msra.gmra.mrb[0].mxu1 %vm308_vm2, %v415_v26 }
 0x33a   : > { %1961 = vmatpush3.msk.msra.mxu0 %vm425_vm3, %v576_v27  ;;  %1962 = vmatprep.mubr.msk.f32.mxu0 %vm2341_vm4, %v2340_v8 }
 0x33b   : > { %1966 = vmatpush3.msk.msra.mxu1 %vm425_vm3, %v655_v29  ;;  %1967 = vmatprep.mubr.msk.f32.mxu1 %vm2341_vm4, %v2340_v8 }
 0x33c   : > { %1970 = vmatprep.subr.mxu0 %v2340_v8  ;;  %1975 = vmatprep.subr.mxu1 %v2340_v8 }
 0x33d   : > { %1963 = vmatmul.mubr.msk.f32.vlgmr.msra.gmra.mrb[2].mxu0 %vm308_vm2, %v417_v23  ;;  %1968 = vmatmul.mubr.msk.f32.vlgmr.msra.gmra.mrb[2].mxu1 %vm308_vm2, %v418_v48 }
 0x33e   : > { %1971 = vmatpush3.msk.msra.mxu0 %vm916_vm5, %v910_v50  ;;  %1972 = vmatprep.mubr.msk.f32.mxu0 %vm2341_vm4, %v2340_v8 }
 0x33f   : > { %1976 = vmatpush3.msk.msra.mxu1 %vm916_vm5, %v908_v0  ;;  %1977 = vmatprep.mubr.msk.f32.mxu1 %vm2341_vm4, %v2340_v8 }
 0x340   : > { %1980 = vmatprep.subr.mxu0 %v2340_v8  ;;  %1985 = vmatprep.subr.mxu1 %v2340_v8 }
 0x368   : > { %v913_v32 = vpop.permute.xlu1 %912  ;;  %v992_v33 = vpop.permute.xlu0 %991 }
 0x369   : > { %1973 = vmatmul.mubr.msk.f32.vlgmr.msra.gmra.mrb[4].mxu0 %vm762_vm0, %v913_v32  ;;  %1978 = vmatmul.mubr.msk.f32.vlgmr.msra.gmra.mrb[4].mxu1 %vm762_vm0, %v992_v33 }
 0x36a   : > { %1981 = vmatpush3.msk.msra.mxu0 %vm916_vm5, %v1069_v31  ;;  %1982 = vmatprep.mubr.msk.f32.mxu0 %vm2341_vm4, %v2340_v8 }
 0x36b   : > { %1986 = vmatpush3.msk.msra.mxu1 %vm916_vm5, %v1150_v34  ;;  %1987 = vmatprep.mubr.msk.f32.mxu1 %vm2341_vm4, %v2340_v8 }
 0x36c   : > { %v1072_v36 = vpop.permute.xlu1 %1071  ;;  %1990 = vmatprep.subr.mxu0 %v2340_v8  ;;  %1995 = vmatprep.subr.mxu1 %v2340_v8 }
 0x36d   : > { %1983 = vmatmul.mubr.msk.f32.vlgmr.msra.gmra.mrb[6].mxu0 %vm762_vm0, %v1072_v36 }
 0x36e   : > { %1991 = vmatpush3.msra.mxu0 %v1409_v35  ;;  %1992 = vmatprep.mubr.msk.f32.mxu0 %vm2341_vm4, %v2340_v8 }
 0x36f   : > { %2000 = vmatprep.subr.mxu0 %v2340_v8 }
 0x370   : > { %v1153_v38 = vpop.permute.xlu1 %1152 }
 0x371   : > { %1988 = vmatmul.mubr.msk.f32.vlgmr.msra.gmra.mrb[6].mxu1 %vm762_vm0, %v1153_v38 }
 0x372   : > { %1996 = vmatpush3.msra.mxu1 %v1407_v37  ;;  %1997 = vmatprep.mubr.msk.f32.mxu1 %vm2341_vm4, %v2340_v8 }
 0x373   : > { %2005 = vmatprep.subr.mxu1 %v2340_v8 }
 0x376   : > { %v1487_v43 = vpop.permute.xlu1 %1486  ;;  %v1412_v45 = vpop.permute.xlu0 %1411 }
 0x377   : > { %1993 = vmatmul.mubr.msk.f32.vlgmr.msra.gmra.mrb[8].mxu0 %vm1261_vm1, %v1412_v45  ;;  %1998 = vmatmul.mubr.msk.f32.vlgmr.msra.gmra.mrb[8].mxu1 %vm1261_vm1, %v1487_v43 }
 0x378   : > { %2001 = vmatpush3.msra.mxu0 %v1561_v39  ;;  %2006 = vmatpush3.msra.mxu1 %v1639_v42 }
 0x379   : > { %2002 = vmatprep.mubr.msk.f32.mxu0 %vm2341_vm4, %v2340_v8  ;;  %2007 = vmatprep.mubr.msk.f32.mxu1 %vm2341_vm4, %v2340_v8  ;;  %v1887_v8 = vld [vmem:[%s2923_s4] ss:$0 sm:$0xff] }
 0x37a   : > { %v1642_v46 = vpop.permute.xlu1 %1641  ;;  %v1564_v47 = vpop.permute.xlu0 %1563 }
 0x37b   : > { %2003 = vmatmul.mubr.msk.f32.vlgmr.msra.gmra.mrb[10].mxu0 %vm1261_vm1, %v1564_v47  ;;  %2008 = vmatmul.mubr.msk.f32.vlgmr.msra.gmra.mrb[10].mxu1 %vm1261_vm1, %v1642_v46 }
 0x40c   : > { %v495_v40 = vpop.f32.mrb[0].mxu0  ;;  %v571_v41 = vpop.f32.mrb[0].mxu1 }
 0x40d   : > { %v572_v44 = vadd.f32 %v571_v41, %v495_v40  ;;  %v1954_v18 = vpop.f32.mrb[1].mxu0  ;;  %v1959_v54 = vpop.f32.mrb[1].mxu1 }
 0x410   : > { %v649_v56 = vpop.f32.mrb[2].mxu0  ;;  %v728_v20 = vpop.f32.mrb[2].mxu1 }
 0x411   : > { %v653_v49 = vadd.f32 %v649_v56, %v572_v44  ;;  %v1964_v24 = vpop.f32.mrb[3].mxu0  ;;  %v1969_v51 = vpop.f32.mrb[3].mxu1 }
 0x413   : > { %v732_v52 = vadd.f32 %v728_v20, %v653_v49 }
 0x415   : > { %v740_v53 = vadd.f32 %v1887_v8, %v732_v52 }
 0x417   : > { %741 = vst [vmem:[%s2851_s11] sm:$0xff] %v740_v53 }
 0x43c   : > { %v986_v55 = vpop.f32.mrb[4].mxu0  ;;  %v1064_v57 = vpop.f32.mrb[4].mxu1 }
 0x43d   : > { %v1065_v58 = vadd.f32 %v1064_v57, %v986_v55  ;;  %v1974_v3 = vpop.f32.mrb[5].mxu0  ;;  %v1979_v5 = vpop.f32.mrb[5].mxu1 }
 0x440   : > { %v1144_v61 = vpop.f32.mrb[6].mxu0 }
 0x441   : > { %v1148_v62 = vadd.f32 %v1144_v61, %v1065_v58  ;;  %v1984_v6 = vpop.f32.mrb[7].mxu0 }
 0x444   : > { %v1225_v59 = vpop.f32.mrb[6].mxu1 }
 0x445   : > { %v1229_v60 = vadd.f32 %v1225_v59, %v1148_v62  ;;  %v1989_v4 = vpop.f32.mrb[7].mxu1 }
 0x447   : > { %v1238_v63 = vadd.f32 %v1905_v1, %v1229_v60 }
 0x449   : > { %1906 = vst [vmem:[%s2851_s11 + $0x8] sm:$0xff] %v1238_v63 }
 0x44a   : > { %v1481_v7 = vpop.f32.mrb[8].mxu0  ;;  %v1556_v9 = vpop.f32.mrb[8].mxu1 }
 0x44b   : > { %v1557_v10 = vadd.f32 %v1556_v9, %v1481_v7  ;;  %v1994_v11 = vpop.f32.mrb[9].mxu0  ;;  %v1999_v13 = vpop.f32.mrb[9].mxu1 }
 0x44e   : > { %v1633_v14 = vpop.f32.mrb[10].mxu0  ;;  %v1711_v15 = vpop.f32.mrb[10].mxu1 }
 0x44f   : > { %v1637_v16 = vadd.f32 %v1633_v14, %v1557_v10  ;;  %v2004_v17 = vpop.f32.mrb[11].mxu0  ;;  %v2009_v12 = vpop.f32.mrb[11].mxu1 }
 0x451   : > { %v1715_v22 = vadd.f32 %v1711_v15, %v1637_v16 }
 0x453   : > { %v1724_v25 = vadd.f32 %v1920_v19, %v1715_v22 }
 0x455   : > { %1921 = vst [vmem:[%s2851_s11 + $0x10] sm:$0xff] %v1724_v25 }
 0x456   : > { %2249 = shalt.err (!%p2246_p0)
}
 0x457   : > { %s2250_s7 = scalar_lea.hbm %s2868_s30, 384  ;;  %s2254_s8 = scalar_lea.hbm %s2924_s5, 768 }
 0x458   : > { %p2251_p4 = scmp.ne.s32.totalorder %s2868_s30, %s2250_s7  ;;  %p2255_p12 = scmp.lt.u32.totalorder %s2868_s30, %s2924_s5 }
 0x459   : > { %p2256_p1 = scmp.lt.u32.totalorder %s2254_s8, %s2250_s7  ;;  %p2258_p11 = scmp.lt.u32.totalorder %s2250_s7, %s2868_s30 }
 0x45a   : > { %p2252_p2 = pnand %p2251_p4, %p2528_p10 }
 0x45b   : > { %p2257_p13 = por %p2256_p1, %p2255_p12 }
 0x45c   : > { %p2253_p8 = pneg %p2252_p2 }
 0x45d   : > { %p2259_p6 = por %p2258_p11, %p2257_p13 }
 0x45f   : > { %p2260_p3 = pnand %p2259_p6, %p2253_p8 }
 0x461   : > { %2263 = shalt.err (!%p2260_p3)
}
 0x462   : > { %s2343_s16 = smov 128  }
 0x463   : > { %2026 = dma.vmem_to_hbm [thread:$0]  (%p2528_p10), %s2863_s9, 384, %s2868_s30, %s1728_s26, %s2343_s16, %s2343_s16, %s2339_s10  }
 0x464 PF: > { %s2946_s25 = sld [smem:[#allocation15_spill]]  ;;  %s2947_s6 = sld [smem:[#allocation16_spill]] }
 0x465   : > { %p2949_p7 = scmp.ge.s32.totalorder %s2326_s23, 2 }
 0x46a   : > { %s1757_s28 = sand.u32 1, %s2946_s25   ;;  %p2948_p5 = scmp.ne.s32.totalorder %s2947_s6, 0 }
 0x46b   : > { %s1758_s21 = scalar_lea.sflag [#allocation4], %s1757_s28 }
 0x46c   : > { %p2043_p9 = pnand %p2949_p7, %p2948_p5 }
 0x46e   : > { %2301 = dma.done.wait (!%p2043_p9), %s1758_s21, 384  }
 0x46f   : > { %2303 = vsyncadd (!%p2043_p9), %s1758_s21, 4294966912  ;;  %s23_s23 = sadd.s32 1, %s2326_s23   ;;  %s2950_s18 = smov %s2310_s19 }
 0x470   : > { %p20_p0 = scmp.ge.s32.totalorder %s23_s23, 4   ;;  %s2951_s19 = smov %s2314_s20 }
 0x471   : > { %s2952_s20 = smov %s2540_s17  ;;  %s2953_s21 = smov %s2322_s22 }
 0x472   : > { %s2954_s22 = smov %s2956_s29  ;;  %22 = sbr.rel (!%p20_p0) target bundleno = 8 (0x8), region = 116 }
 0x479   :  { %1763 = vsyncpa [#allocation3], 1 }
 0x47a   :  { %1765 = vsyncpa [#allocation3 + $0x1], 1 }
 0x47b   :  { %1766 = vsyncpa [#allocation6], 1 }
 0x47c   :  { %1767 = vsyncpa [#allocation9], 1 }
 0x47d   :  { %1768 = vsyncpa [#allocation4], 1 }
 0x47e   :  { %1770 = vsyncpa [#allocation4 + $0x1], 1 }

</bundles_post_ra>
